<compile_context>
chip_gen: v7x
topology: tpu7x:2x2x1
jax: 0.10.0
libtpu: 0.0.40
codegen_flags: <defaults>
</compile_context>

<pallas_src>
import functools
import math

import jax
import jax.numpy as jnp
from jax import lax
from jax.experimental import pallas as pl
from jax.experimental.pallas import tpu as pltpu

IGNORE_INDEX = 255.0
SMOOTH_FACTOR = 0.05      # SoftBCEWithLogitsLoss smooth_factor
DICE_SMOOTH = 0.05
DICE_EPS = 1e-7
DEFAULT_EDGE_FACTOR = 10.0

# Edge-BCE constants: after thresholding, boundary_pre in {0, 1}; x/(x+0.01) maps
# it to {0, a} with a = 1/1.01, and BCE-with-logits on a two-valued logit
# collapses to a select between constants.  The boundary_pre == 0 value (ln 2)
# is added in the epilogue so the in-kernel select only fires where bp == 1.
_A = 1.0 / 1.01
_LN2 = math.log(2.0)
_C_P1_T0 = _A + math.log1p(math.exp(-_A))   # boundary_pre = 1, boundary_target = 0
_C_P1_T1 = math.log1p(math.exp(-_A))        # boundary_pre = 1, boundary_target = 1


def _sigmoid(x):
    # one EUP op (tanh) instead of exp + divide
    return 0.5 * (jnp.tanh(0.5 * x) + 1.0)


def _edge_loss_kernel(*refs, n_row_tiles, tiled, edge_factor):
    if tiled:
        (logits_ref, targets_ref,
         logits_up_ref, targets_up_ref,
         logits_dn_ref, targets_dn_ref, out_ref) = refs
    else:
        logits_ref, targets_ref, out_ref = refs

    th = logits_ref.shape[2]
    w = logits_ref.shape[3]

    # Native-dtype tiles, cast to f32 in VMEM.
    z = logits_ref[0, 0].astype(jnp.float32)     # (TH, W)
    t = targets_ref[0, 0].astype(jnp.float32)    # raw targets (255 == ignore)

    # ---- hoisted index vectors / border masks (shared by both boundaries) ----
    row = lax.broadcasted_iota(jnp.int32, (th, w), 0)
    col = lax.broadcasted_iota(jnp.int32, (th, w), 1)
    row_first = row == 0
    row_last = row == th - 1
    col_first = col == 0
    col_last = col == w - 1
    col1 = lax.broadcasted_iota(jnp.int32, (1, w), 1)
    col1_first = col1 == 0
    col1_last = col1 == w - 1

    # ---- halo rows (zeroed when outside the image -> zero padding) ----
    if tiled:
        k = pl.program_id(1)
        has_up = (k > 0).astype(jnp.float32)
        has_dn = (k < n_row_tiles - 1).astype(jnp.float32)
        t_up = targets_up_ref[0, 0][7:8, :].astype(jnp.float32) * has_up
        t_dn = targets_dn_ref[0, 0][0:1, :].astype(jnp.float32) * has_dn
        p_up = _sigmoid(logits_up_ref[0, 0][7:8, :].astype(jnp.float32)) * has_up
        p_dn = _sigmoid(logits_dn_ref[0, 0][0:1, :].astype(jnp.float32)) * has_dn
    else:
        zero_row = jnp.zeros((1, w), jnp.float32)
        t_up = t_dn = p_up = p_dn = zero_row

    def lane_rowsum(x, first, last):
        # x[:, j-1] + x[:, j] + x[:, j+1] with zero padding across W (XLU rolls).
        left = jnp.where(first, 0.0, pltpu.roll(x, shift=1 % w, axis=1))
        right = jnp.where(last, 0.0, pltpu.roll(x, shift=(w - 1) % w, axis=1))
        return x + left + right

    def boundary(x, up_row, dn_row):
        # 3x3 laplacian [[-1,-1,-1],[-1,8,-1],[-1,-1,-1]], zero padded, written
        # as 9*x - box3(x); clamp(0,1) + threshold(0.1) folds to (lap >= 0.1).
        r = lane_rowsum(x, col_first, col_last)
        r_up = lane_rowsum(up_row, col1_first, col1_last)
        r_dn = lane_rowsum(dn_row, col1_first, col1_last)
        from_up = jnp.where(row_first, r_up, pltpu.roll(r, shift=1 % th, axis=0))
        from_dn = jnp.where(row_last, r_dn, pltpu.roll(r, shift=(th - 1) % th, axis=0))
        lap = 9.0 * x - (r + from_up + from_dn)
        return lap >= 0.1

    valid = (t != IGNORE_INDEX).astype(jnp.float32)
    tm = t * valid                                # ignore-masked targets
    p = _sigmoid(z)
    pm = p * valid                                # ignore-masked probabilities

    # ---- SoftBCEWithLogitsLoss, element-wise (ignored pixels contribute 0) ----
    soft_t = SMOOTH_FACTOR + tm * (1.0 - 2.0 * SMOOTH_FACTOR)
    # log(1 + exp(-|z|)) saturates to 0 for |z| >~ 16 (abs err < 1e-7): fine for a mean loss.
    bce = (jnp.maximum(z, 0.0) - z * soft_t
           + jnp.log(1.0 + jnp.exp(-jnp.abs(z)))) * valid

    # ---- edge term: constant-folded BCE on the thresholded laplacians, fused
    #      into the same reduction as the SoftBCE term.
    bt = boundary(t, t_up, t_dn)       # boundaries of *raw* targets (reference behaviour)
    bp = boundary(p, p_up, p_dn)
    e_t0 = edge_factor * (_C_P1_T0 - _LN2)
    e_t1 = edge_factor * (_C_P1_T1 - _LN2)
    combined = bce + jnp.where(bp, jnp.where(bt, e_t1, e_t0), 0.0)

    # ---- fused axis-0 (sublane) partial reductions into a lane-wide block ----
    out_ref[0, 0, 0, :] = jnp.sum(combined, axis=0)
    out_ref[0, 0, 1, :] = jnp.sum(pm * tm, axis=0)     # dice intersection
    out_ref[0, 0, 2, :] = jnp.sum(pm + tm, axis=0)     # dice cardinality
    out_ref[0, 0, 3, :] = jnp.sum(tm, axis=0)          # target mass (dice gate)


def _pick_tile_rows(H, W, max_tile_rows=None):
    """Largest multiple of 8 dividing H, bounded so a (TH, W) f32 tile stays ~<= 1 MiB."""
    if H % 8 != 0:
        return H
    budget = max(8, (((1 << 18) // max(W, 1)) // 8) * 8)
    cap = min(H, budget)
    if max_tile_rows is not None:
        cap = min(cap, max(8, (max_tile_rows // 8) * 8))
    th = 8
    for cand in range(8, cap + 1, 8):
        if H % cand == 0:
            th = cand
    return th


def edge_loss(logits, targets, edge_factor=DEFAULT_EDGE_FACTOR, max_tile_rows=None):
    """Forward pass of opencd EdgeLoss.  logits/targets are NCHW with C == 1."""
    B, C, H, W = logits.shape
    assert C == 1, "EdgeLoss expects single-channel (binary) logits/targets"
    assert targets.shape == logits.shape
    # NB: no dtype upcast here — tiles are cast to f32 inside the kernel.

    TH = _pick_tile_rows(H, W, max_tile_rows)
    nH = H // TH
    tiled = nH > 1

    main_spec = lambda: pl.BlockSpec((1, 1, TH, W), lambda b, k: (b, 0, k, 0))
    in_specs = [main_spec(), main_spec()]
    args = [logits, targets]
    if tiled:
        thb = TH // 8
        last_hb = H // 8 - 1
        # 8-row halo blocks holding the image row just above / below the tile;
        # clamped in-bounds at the image border (content masked off in-kernel).
        up_map = lambda b, k: (b, 0, jnp.maximum(k * thb - 1, 0), 0)
        dn_map = lambda b, k: (b, 0, jnp.minimum((k + 1) * thb, last_hb), 0)
        halo = lambda m: pl.BlockSpec((1, 1, 8, W), m)
        in_specs += [halo(up_map), halo(up_map), halo(dn_map), halo(dn_map)]
        args += [logits, targets, logits, targets]

    kernel = functools.partial(_edge_loss_kernel, n_row_tiles=nH, tiled=tiled,
                               edge_factor=float(edge_factor))

    in_bytes = logits.dtype.itemsize + targets.dtype.itemsize
    tile_px = TH * W
    vmem_est = (2 * tile_px * in_bytes                      # double-buffered main inputs
                + (2 * 2 * 8 * W * in_bytes if tiled else 0)  # double-buffered halos
                + 2 * 4 * W * 4                             # output blocks
                + 16 * tile_px * 4                          # f32 temporaries (generous)
                + (1 << 20))
    vmem_limit = int(min(64 * (1 << 20), max(vmem_est, 32 * (1 << 20))))

    n_pix = B * H * W
    cost = pl.CostEstimate(
        flops=60 * n_pix,
        transcendentals=3 * n_pix,
        bytes_accessed=int(logits.size * logits.dtype.itemsize
                           + targets.size * targets.dtype.itemsize
                           + B * nH * 4 * W * 4))

    acc = pl.pallas_call(
        kernel,
        out_shape=jax.ShapeDtypeStruct((B, nH, 4, W), jnp.float32),
        grid=(B, nH),
        in_specs=in_specs,
        out_specs=pl.BlockSpec((1, 1, 4, W), lambda b, k: (b, k, 0, 0)),
        compiler_params=pltpu.CompilerParams(
            dimension_semantics=("parallel", "parallel"),
            vmem_limit_bytes=vmem_limit),
        cost_estimate=cost,
    )(*args)

    # ---- epilogue: cross-lane collapse + scalar loss assembly ----
    sums = jnp.sum(acc, axis=(0, 1, 3))          # (4,)
    combined, inter, card, tsum = sums[0], sums[1], sums[2], sums[3]

    n = float(B * C * H * W)
    # SoftBCE mean (ignored pixels contribute 0) + edge BCE mean * edge_factor
    # (its ln2 floor was factored out of the kernel).
    bce_plus_edge = combined / n + float(edge_factor) * _LN2
    # DiceLoss (binary, dims=(0,2)): single score, gated on any positive target.
    dice_score = (2.0 * inter + DICE_SMOOTH) / jnp.maximum(card + DICE_SMOOTH, DICE_EPS)
    dice = (1.0 - dice_score) * (tsum > 0).astype(jnp.float32)
    return bce_plus_edge + dice


if __name__ == "__main__":
    key = jax.random.PRNGKey(0)
    k1, k2, k3 = jax.random.split(key, 3)
    B, C, H, W = 2, 1, 16, 16
    # Native dtypes go straight into the kernel (no wrapper upcast).
    logits = jax.random.normal(k1, (B, C, H, W), dtype=jnp.float32).astype(jnp.bfloat16)
    targets = (jax.random.uniform(k2, (B, C, H, W)) > 0.5).astype(jnp.float32)
    ignore = jax.random.uniform(k3, (B, C, H, W)) < 0.05
    targets = jnp.where(ignore, IGNORE_INDEX, targets)

    # max_tile_rows=8 forces the H-tiled + halo path even at this small size.
    loss = edge_loss(logits, targets, max_tile_rows=8)
    jax.block_until_ready(loss)
    assert bool(jnp.isfinite(loss))
    print("KERNEL_OK")
</pallas_src>

<mosaic_0001>
module attributes {stable_mosaic.version = 11 : i64} {
  func.func @_edge_loss_kernel(%arg0: i32, %arg1: i32, %arg2: memref<1x1x8x16xbf16, #tpu.memory_space<vmem>>, %arg3: memref<1x1x8x16xf32, #tpu.memory_space<vmem>>, %arg4: memref<1x1x8x16xbf16, #tpu.memory_space<vmem>>, %arg5: memref<1x1x8x16xf32, #tpu.memory_space<vmem>>, %arg6: memref<1x1x8x16xbf16, #tpu.memory_space<vmem>>, %arg7: memref<1x1x8x16xf32, #tpu.memory_space<vmem>>, %arg8: memref<1x1x4x16xf32, #tpu.memory_space<vmem>>) attributes {dimension_semantics = [#tpu.dimension_semantics<parallel>, #tpu.dimension_semantics<parallel>], iteration_bounds = array<i64: 2, 2>, scalar_prefetch = 0 : i64, scratch_operands = 0 : i64, tpu.core_type = #tpu.core_type<tc>, window_params = [{transform_indices = @transform_0, window_bounds = array<i64: 1, 1, 8, 16>}, {transform_indices = @transform_1, window_bounds = array<i64: 1, 1, 8, 16>}, {transform_indices = @transform_2, window_bounds = array<i64: 1, 1, 8, 16>}, {transform_indices = @transform_3, window_bounds = array<i64: 1, 1, 8, 16>}, {transform_indices = @transform_4, window_bounds = array<i64: 1, 1, 8, 16>}, {transform_indices = @transform_5, window_bounds = array<i64: 1, 1, 8, 16>}, {transform_indices = @transform_6, window_bounds = array<i64: 1, 1, 4, 16>}]} {
    %c0 = arith.constant 0 : index
    %c0_0 = arith.constant 0 : index
    %c0_1 = arith.constant 0 : index
    %c0_2 = arith.constant 0 : index
    %0 = vector.load %arg2[%c0, %c0_0, %c0_1, %c0_2] : memref<1x1x8x16xbf16, #tpu.memory_space<vmem>>, vector<1x1x8x16xbf16>
    %1 = vector.shape_cast %0 : vector<1x1x8x16xbf16> to vector<8x16xbf16>
    %2 = arith.extf %1 : vector<8x16xbf16> to vector<8x16xf32>
    %c0_3 = arith.constant 0 : index
    %c0_4 = arith.constant 0 : index
    %c0_5 = arith.constant 0 : index
    %c0_6 = arith.constant 0 : index
    %3 = vector.load %arg3[%c0_3, %c0_4, %c0_5, %c0_6] : memref<1x1x8x16xf32, #tpu.memory_space<vmem>>, vector<1x1x8x16xf32>
    %4 = vector.shape_cast %3 : vector<1x1x8x16xf32> to vector<8x16xf32>
    %5 = tpu.iota {dimensions = array<i32: 0>} : vector<8x16xi32>
    %6 = tpu.iota {dimensions = array<i32: 1>} : vector<8x16xi32>
    %c0_i32 = arith.constant 0 : i32
    %7 = vector.broadcast %c0_i32 : i32 to vector<8x16xi32>
    %8 = arith.cmpi eq, %5, %7 : vector<8x16xi32>
    %c7_i32 = arith.constant 7 : i32
    %9 = vector.broadcast %c7_i32 : i32 to vector<8x16xi32>
    %10 = arith.cmpi eq, %5, %9 : vector<8x16xi32>
    %c0_i32_7 = arith.constant 0 : i32
    %11 = vector.broadcast %c0_i32_7 : i32 to vector<8x16xi32>
    %12 = arith.cmpi eq, %6, %11 : vector<8x16xi32>
    %c15_i32 = arith.constant 15 : i32
    %13 = vector.broadcast %c15_i32 : i32 to vector<8x16xi32>
    %14 = arith.cmpi eq, %6, %13 : vector<8x16xi32>
    %15 = tpu.iota {dimensions = array<i32: 1>} : vector<1x16xi32>
    %c0_i32_8 = arith.constant 0 : i32
    %16 = vector.broadcast %c0_i32_8 : i32 to vector<1x16xi32>
    %17 = arith.cmpi eq, %15, %16 : vector<1x16xi32>
    %c15_i32_9 = arith.constant 15 : i32
    %18 = vector.broadcast %c15_i32_9 : i32 to vector<1x16xi32>
    %19 = arith.cmpi eq, %15, %18 : vector<1x16xi32>
    %c0_i32_10 = arith.constant 0 : i32
    %20 = arith.cmpi sgt, %arg1, %c0_i32_10 : i32
    %21 = arith.extui %20 : i1 to i32
    %22 = arith.sitofp %21 : i32 to f32
    %c1_i32 = arith.constant 1 : i32
    %23 = arith.cmpi slt, %arg1, %c1_i32 : i32
    %24 = arith.extui %23 : i1 to i32
    %25 = arith.sitofp %24 : i32 to f32
    %c0_11 = arith.constant 0 : index
    %c0_12 = arith.constant 0 : index
    %c0_13 = arith.constant 0 : index
    %c0_14 = arith.constant 0 : index
    %26 = vector.load %arg5[%c0_11, %c0_12, %c0_13, %c0_14] : memref<1x1x8x16xf32, #tpu.memory_space<vmem>>, vector<1x1x8x16xf32>
    %27 = vector.shape_cast %26 : vector<1x1x8x16xf32> to vector<8x16xf32>
    %28 = vector.extract_strided_slice %27 {offsets = [7, 0], sizes = [1, 16], strides = [1, 1]} : vector<8x16xf32> to vector<1x16xf32>
    %29 = vector.broadcast %22 : f32 to vector<1x16xf32>
    %30 = arith.mulf %28, %29 : vector<1x16xf32>
    %c0_15 = arith.constant 0 : index
    %c0_16 = arith.constant 0 : index
    %c0_17 = arith.constant 0 : index
    %c0_18 = arith.constant 0 : index
    %31 = vector.load %arg7[%c0_15, %c0_16, %c0_17, %c0_18] : memref<1x1x8x16xf32, #tpu.memory_space<vmem>>, vector<1x1x8x16xf32>
    %32 = vector.shape_cast %31 : vector<1x1x8x16xf32> to vector<8x16xf32>
    %33 = vector.extract_strided_slice %32 {offsets = [0, 0], sizes = [1, 16], strides = [1, 1]} : vector<8x16xf32> to vector<1x16xf32>
    %34 = vector.broadcast %25 : f32 to vector<1x16xf32>
    %35 = arith.mulf %33, %34 : vector<1x16xf32>
    %c0_19 = arith.constant 0 : index
    %c0_20 = arith.constant 0 : index
    %c0_21 = arith.constant 0 : index
    %c0_22 = arith.constant 0 : index
    %36 = vector.load %arg4[%c0_19, %c0_20, %c0_21, %c0_22] : memref<1x1x8x16xbf16, #tpu.memory_space<vmem>>, vector<1x1x8x16xbf16>
    %37 = vector.shape_cast %36 : vector<1x1x8x16xbf16> to vector<8x16xbf16>
    %38 = vector.extract_strided_slice %37 {offsets = [7, 0], sizes = [1, 16], strides = [1, 1]} : vector<8x16xbf16> to vector<1x16xbf16>
    %39 = arith.extf %38 : vector<1x16xbf16> to vector<1x16xf32>
    %cst = arith.constant 5.000000e-01 : f32
    %40 = vector.broadcast %cst : f32 to vector<1x16xf32>
    %41 = arith.mulf %40, %39 : vector<1x16xf32>
    %42 = math.tanh %41 : vector<1x16xf32>
    %cst_23 = arith.constant 1.000000e+00 : f32
    %43 = vector.broadcast %cst_23 : f32 to vector<1x16xf32>
    %44 = arith.addf %42, %43 : vector<1x16xf32>
    %cst_24 = arith.constant 5.000000e-01 : f32
    %45 = vector.broadcast %cst_24 : f32 to vector<1x16xf32>
    %46 = arith.mulf %45, %44 : vector<1x16xf32>
    %47 = vector.broadcast %22 : f32 to vector<1x16xf32>
    %48 = arith.mulf %46, %47 : vector<1x16xf32>
    %c0_25 = arith.constant 0 : index
    %c0_26 = arith.constant 0 : index
    %c0_27 = arith.constant 0 : index
    %c0_28 = arith.constant 0 : index
    %49 = vector.load %arg6[%c0_25, %c0_26, %c0_27, %c0_28] : memref<1x1x8x16xbf16, #tpu.memory_space<vmem>>, vector<1x1x8x16xbf16>
    %50 = vector.shape_cast %49 : vector<1x1x8x16xbf16> to vector<8x16xbf16>
    %51 = vector.extract_strided_slice %50 {offsets = [0, 0], sizes = [1, 16], strides = [1, 1]} : vector<8x16xbf16> to vector<1x16xbf16>
    %52 = arith.extf %51 : vector<1x16xbf16> to vector<1x16xf32>
    %cst_29 = arith.constant 5.000000e-01 : f32
    %53 = vector.broadcast %cst_29 : f32 to vector<1x16xf32>
    %54 = arith.mulf %53, %52 : vector<1x16xf32>
    %55 = math.tanh %54 : vector<1x16xf32>
    %cst_30 = arith.constant 1.000000e+00 : f32
    %56 = vector.broadcast %cst_30 : f32 to vector<1x16xf32>
    %57 = arith.addf %55, %56 : vector<1x16xf32>
    %cst_31 = arith.constant 5.000000e-01 : f32
    %58 = vector.broadcast %cst_31 : f32 to vector<1x16xf32>
    %59 = arith.mulf %58, %57 : vector<1x16xf32>
    %60 = vector.broadcast %25 : f32 to vector<1x16xf32>
    %61 = arith.mulf %59, %60 : vector<1x16xf32>
    %cst_32 = arith.constant 2.550000e+02 : f32
    %62 = vector.broadcast %cst_32 : f32 to vector<8x16xf32>
    %63 = arith.cmpf one, %4, %62 : vector<8x16xf32>
    %64 = arith.extui %63 : vector<8x16xi1> to vector<8x16xi32>
    %65 = arith.sitofp %64 : vector<8x16xi32> to vector<8x16xf32>
    %66 = arith.mulf %4, %65 : vector<8x16xf32>
    %cst_33 = arith.constant 5.000000e-01 : f32
    %67 = vector.broadcast %cst_33 : f32 to vector<8x16xf32>
    %68 = arith.mulf %67, %2 : vector<8x16xf32>
    %69 = math.tanh %68 : vector<8x16xf32>
    %cst_34 = arith.constant 1.000000e+00 : f32
    %70 = vector.broadcast %cst_34 : f32 to vector<8x16xf32>
    %71 = arith.addf %69, %70 : vector<8x16xf32>
    %cst_35 = arith.constant 5.000000e-01 : f32
    %72 = vector.broadcast %cst_35 : f32 to vector<8x16xf32>
    %73 = arith.mulf %72, %71 : vector<8x16xf32>
    %74 = arith.mulf %73, %65 : vector<8x16xf32>
    %cst_36 = arith.constant 0.899999976 : f32
    %75 = vector.broadcast %cst_36 : f32 to vector<8x16xf32>
    %76 = arith.mulf %66, %75 : vector<8x16xf32>
    %cst_37 = arith.constant 5.000000e-02 : f32
    %77 = vector.broadcast %cst_37 : f32 to vector<8x16xf32>
    %78 = arith.addf %77, %76 : vector<8x16xf32>
    %cst_38 = arith.constant 0.000000e+00 : f32
    %79 = vector.broadcast %cst_38 : f32 to vector<8x16xf32>
    %80 = arith.maximumf %2, %79 : vector<8x16xf32>
    %81 = arith.mulf %2, %78 : vector<8x16xf32>
    %82 = arith.subf %80, %81 : vector<8x16xf32>
    %83 = math.absf %2 : vector<8x16xf32>
    %cst_39 = arith.constant 0.000000e+00 : f32
    %84 = vector.broadcast %cst_39 : f32 to vector<8x16xf32>
    %85 = arith.subf %84, %83 : vector<8x16xf32>
    %86 = math.exp %85 : vector<8x16xf32>
    %cst_40 = arith.constant 1.000000e+00 : f32
    %87 = vector.broadcast %cst_40 : f32 to vector<8x16xf32>
    %88 = arith.addf %87, %86 : vector<8x16xf32>
    %89 = math.log %88 : vector<8x16xf32>
    %90 = arith.addf %82, %89 : vector<8x16xf32>
    %91 = arith.mulf %90, %65 : vector<8x16xf32>
    %c1_i32_41 = arith.constant 1 : i32
    %92 = tpu.dynamic_rotate %4 by %c1_i32_41 dim 1 : vector<8x16xf32>, i32 -> vector<8x16xf32>
    %cst_42 = arith.constant 0.000000e+00 : f32
    %93 = vector.broadcast %cst_42 : f32 to vector<8x16xf32>
    %94 = arith.select %12, %93, %92 : vector<8x16xi1>, vector<8x16xf32>
    %c15_i32_43 = arith.constant 15 : i32
    %95 = tpu.dynamic_rotate %4 by %c15_i32_43 dim 1 : vector<8x16xf32>, i32 -> vector<8x16xf32>
    %cst_44 = arith.constant 0.000000e+00 : f32
    %96 = vector.broadcast %cst_44 : f32 to vector<8x16xf32>
    %97 = arith.select %14, %96, %95 : vector<8x16xi1>, vector<8x16xf32>
    %98 = arith.addf %4, %94 : vector<8x16xf32>
    %99 = arith.addf %98, %97 : vector<8x16xf32>
    %c1_i32_45 = arith.constant 1 : i32
    %100 = tpu.dynamic_rotate %30 by %c1_i32_45 dim 1 : vector<1x16xf32>, i32 -> vector<1x16xf32>
    %cst_46 = arith.constant 0.000000e+00 : f32
    %101 = vector.broadcast %cst_46 : f32 to vector<1x16xf32>
    %102 = arith.select %17, %101, %100 : vector<1x16xi1>, vector<1x16xf32>
    %c15_i32_47 = arith.constant 15 : i32
    %103 = tpu.dynamic_rotate %30 by %c15_i32_47 dim 1 : vector<1x16xf32>, i32 -> vector<1x16xf32>
    %cst_48 = arith.constant 0.000000e+00 : f32
    %104 = vector.broadcast %cst_48 : f32 to vector<1x16xf32>
    %105 = arith.select %19, %104, %103 : vector<1x16xi1>, vector<1x16xf32>
    %106 = arith.addf %30, %102 : vector<1x16xf32>
    %107 = arith.addf %106, %105 : vector<1x16xf32>
    %c1_i32_49 = arith.constant 1 : i32
    %108 = tpu.dynamic_rotate %35 by %c1_i32_49 dim 1 : vector<1x16xf32>, i32 -> vector<1x16xf32>
    %cst_50 = arith.constant 0.000000e+00 : f32
    %109 = vector.broadcast %cst_50 : f32 to vector<1x16xf32>
    %110 = arith.select %17, %109, %108 : vector<1x16xi1>, vector<1x16xf32>
    %c15_i32_51 = arith.constant 15 : i32
    %111 = tpu.dynamic_rotate %35 by %c15_i32_51 dim 1 : vector<1x16xf32>, i32 -> vector<1x16xf32>
    %cst_52 = arith.constant 0.000000e+00 : f32
    %112 = vector.broadcast %cst_52 : f32 to vector<1x16xf32>
    %113 = arith.select %19, %112, %111 : vector<1x16xi1>, vector<1x16xf32>
    %114 = arith.addf %35, %110 : vector<1x16xf32>
    %115 = arith.addf %114, %113 : vector<1x16xf32>
    %c1_i32_53 = arith.constant 1 : i32
    %116 = tpu.dynamic_rotate %99 by %c1_i32_53 dim 0 : vector<8x16xf32>, i32 -> vector<8x16xf32>
    %117 = vector.shape_cast %107 : vector<1x16xf32> to vector<1x16xf32>
    %118 = vector.broadcast %117 : vector<1x16xf32> to vector<8x16xf32>
    %119 = arith.select %8, %118, %116 : vector<8x16xi1>, vector<8x16xf32>
    %c7_i32_54 = arith.constant 7 : i32
    %120 = tpu.dynamic_rotate %99 by %c7_i32_54 dim 0 : vector<8x16xf32>, i32 -> vector<8x16xf32>
    %121 = vector.shape_cast %115 : vector<1x16xf32> to vector<1x16xf32>
    %122 = vector.broadcast %121 : vector<1x16xf32> to vector<8x16xf32>
    %123 = arith.select %10, %122, %120 : vector<8x16xi1>, vector<8x16xf32>
    %cst_55 = arith.constant 9.000000e+00 : f32
    %124 = vector.broadcast %cst_55 : f32 to vector<8x16xf32>
    %125 = arith.mulf %124, %4 : vector<8x16xf32>
    %126 = arith.addf %99, %119 : vector<8x16xf32>
    %127 = arith.addf %126, %123 : vector<8x16xf32>
    %128 = arith.subf %125, %127 : vector<8x16xf32>
    %cst_56 = arith.constant 1.000000e-01 : f32
    %129 = vector.broadcast %cst_56 : f32 to vector<8x16xf32>
    %130 = arith.cmpf oge, %128, %129 : vector<8x16xf32>
    %c1_i32_57 = arith.constant 1 : i32
    %131 = tpu.dynamic_rotate %73 by %c1_i32_57 dim 1 : vector<8x16xf32>, i32 -> vector<8x16xf32>
    %cst_58 = arith.constant 0.000000e+00 : f32
    %132 = vector.broadcast %cst_58 : f32 to vector<8x16xf32>
    %133 = arith.select %12, %132, %131 : vector<8x16xi1>, vector<8x16xf32>
    %c15_i32_59 = arith.constant 15 : i32
    %134 = tpu.dynamic_rotate %73 by %c15_i32_59 dim 1 : vector<8x16xf32>, i32 -> vector<8x16xf32>
    %cst_60 = arith.constant 0.000000e+00 : f32
    %135 = vector.broadcast %cst_60 : f32 to vector<8x16xf32>
    %136 = arith.select %14, %135, %134 : vector<8x16xi1>, vector<8x16xf32>
    %137 = arith.addf %73, %133 : vector<8x16xf32>
    %138 = arith.addf %137, %136 : vector<8x16xf32>
    %c1_i32_61 = arith.constant 1 : i32
    %139 = tpu.dynamic_rotate %48 by %c1_i32_61 dim 1 : vector<1x16xf32>, i32 -> vector<1x16xf32>
    %cst_62 = arith.constant 0.000000e+00 : f32
    %140 = vector.broadcast %cst_62 : f32 to vector<1x16xf32>
    %141 = arith.select %17, %140, %139 : vector<1x16xi1>, vector<1x16xf32>
    %c15_i32_63 = arith.constant 15 : i32
    %142 = tpu.dynamic_rotate %48 by %c15_i32_63 dim 1 : vector<1x16xf32>, i32 -> vector<1x16xf32>
    %cst_64 = arith.constant 0.000000e+00 : f32
    %143 = vector.broadcast %cst_64 : f32 to vector<1x16xf32>
    %144 = arith.select %19, %143, %142 : vector<1x16xi1>, vector<1x16xf32>
    %145 = arith.addf %48, %141 : vector<1x16xf32>
    %146 = arith.addf %145, %144 : vector<1x16xf32>
    %c1_i32_65 = arith.constant 1 : i32
    %147 = tpu.dynamic_rotate %61 by %c1_i32_65 dim 1 : vector<1x16xf32>, i32 -> vector<1x16xf32>
    %cst_66 = arith.constant 0.000000e+00 : f32
    %148 = vector.broadcast %cst_66 : f32 to vector<1x16xf32>
    %149 = arith.select %17, %148, %147 : vector<1x16xi1>, vector<1x16xf32>
    %c15_i32_67 = arith.constant 15 : i32
    %150 = tpu.dynamic_rotate %61 by %c15_i32_67 dim 1 : vector<1x16xf32>, i32 -> vector<1x16xf32>
    %cst_68 = arith.constant 0.000000e+00 : f32
    %151 = vector.broadcast %cst_68 : f32 to vector<1x16xf32>
    %152 = arith.select %19, %151, %150 : vector<1x16xi1>, vector<1x16xf32>
    %153 = arith.addf %61, %149 : vector<1x16xf32>
    %154 = arith.addf %153, %152 : vector<1x16xf32>
    %c1_i32_69 = arith.constant 1 : i32
    %155 = tpu.dynamic_rotate %138 by %c1_i32_69 dim 0 : vector<8x16xf32>, i32 -> vector<8x16xf32>
    %156 = vector.shape_cast %146 : vector<1x16xf32> to vector<1x16xf32>
    %157 = vector.broadcast %156 : vector<1x16xf32> to vector<8x16xf32>
    %158 = arith.select %8, %157, %155 : vector<8x16xi1>, vector<8x16xf32>
    %c7_i32_70 = arith.constant 7 : i32
    %159 = tpu.dynamic_rotate %138 by %c7_i32_70 dim 0 : vector<8x16xf32>, i32 -> vector<8x16xf32>
    %160 = vector.shape_cast %154 : vector<1x16xf32> to vector<1x16xf32>
    %161 = vector.broadcast %160 : vector<1x16xf32> to vector<8x16xf32>
    %162 = arith.select %10, %161, %159 : vector<8x16xi1>, vector<8x16xf32>
    %cst_71 = arith.constant 9.000000e+00 : f32
    %163 = vector.broadcast %cst_71 : f32 to vector<8x16xf32>
    %164 = arith.mulf %163, %73 : vector<8x16xf32>
    %165 = arith.addf %138, %158 : vector<8x16xf32>
    %166 = arith.addf %165, %162 : vector<8x16xf32>
    %167 = arith.subf %164, %166 : vector<8x16xf32>
    %cst_72 = arith.constant 1.000000e-01 : f32
    %168 = vector.broadcast %cst_72 : f32 to vector<8x16xf32>
    %169 = arith.cmpf oge, %167, %168 : vector<8x16xf32>
    %cst_73 = arith.constant -3.77213049 : f32
    %cst_74 = arith.constant 6.12885951 : f32
    %170 = vector.broadcast %cst_73 : f32 to vector<8x16xf32>
    %171 = vector.broadcast %cst_74 : f32 to vector<8x16xf32>
    %172 = arith.select %130, %170, %171 : vector<8x16xi1>, vector<8x16xf32>
    %cst_75 = arith.constant 0.000000e+00 : f32
    %173 = vector.broadcast %cst_75 : f32 to vector<8x16xf32>
    %174 = arith.select %169, %172, %173 : vector<8x16xi1>, vector<8x16xf32>
    %175 = arith.addf %91, %174 : vector<8x16xf32>
    %cst_76 = arith.constant dense<0.000000e+00> : vector<16xf32>
    %176 = vector.multi_reduction <add>, %175, %cst_76 [0] : vector<8x16xf32> to vector<16xf32>
    %c0_77 = arith.constant 0 : index
    %c0_78 = arith.constant 0 : index
    %c0_79 = arith.constant 0 : index
    %c0_80 = arith.constant 0 : index
    %177 = vector.load %arg8[%c0_77, %c0_78, %c0_79, %c0_80] : memref<1x1x4x16xf32, #tpu.memory_space<vmem>>, vector<1x1x1x16xf32>
    %178 = vector.shape_cast %177 : vector<1x1x1x16xf32> to vector<16xf32>
    %179 = vector.shape_cast %176 : vector<16xf32> to vector<1x1x1x16xf32>
    tpu.vector_store %arg8[%c0_77, %c0_78, %c0_79, %c0_80], %179 {strides = array<i32>} : memref<1x1x4x16xf32, #tpu.memory_space<vmem>>, vector<1x1x1x16xf32>,
    %180 = arith.mulf %74, %66 : vector<8x16xf32>
    %cst_81 = arith.constant dense<0.000000e+00> : vector<16xf32>
    %181 = vector.multi_reduction <add>, %180, %cst_81 [0] : vector<8x16xf32> to vector<16xf32>
    %c0_82 = arith.constant 0 : index
    %c0_83 = arith.constant 0 : index
    %c1 = arith.constant 1 : index
    %c0_84 = arith.constant 0 : index
    %182 = vector.load %arg8[%c0_82, %c0_83, %c1, %c0_84] : memref<1x1x4x16xf32, #tpu.memory_space<vmem>>, vector<1x1x1x16xf32>
    %183 = vector.shape_cast %182 : vector<1x1x1x16xf32> to vector<16xf32>
    %184 = vector.shape_cast %181 : vector<16xf32> to vector<1x1x1x16xf32>
    tpu.vector_store %arg8[%c0_82, %c0_83, %c1, %c0_84], %184 {strides = array<i32>} : memref<1x1x4x16xf32, #tpu.memory_space<vmem>>, vector<1x1x1x16xf32>,
    %185 = arith.addf %74, %66 : vector<8x16xf32>
    %cst_85 = arith.constant dense<0.000000e+00> : vector<16xf32>
    %186 = vector.multi_reduction <add>, %185, %cst_85 [0] : vector<8x16xf32> to vector<16xf32>
    %c0_86 = arith.constant 0 : index
    %c0_87 = arith.constant 0 : index
    %c2 = arith.constant 2 : index
    %c0_88 = arith.constant 0 : index
    %187 = vector.load %arg8[%c0_86, %c0_87, %c2, %c0_88] : memref<1x1x4x16xf32, #tpu.memory_space<vmem>>, vector<1x1x1x16xf32>
    %188 = vector.shape_cast %187 : vector<1x1x1x16xf32> to vector<16xf32>
    %189 = vector.shape_cast %186 : vector<16xf32> to vector<1x1x1x16xf32>
    tpu.vector_store %arg8[%c0_86, %c0_87, %c2, %c0_88], %189 {strides = array<i32>} : memref<1x1x4x16xf32, #tpu.memory_space<vmem>>, vector<1x1x1x16xf32>,
    %cst_89 = arith.constant dense<0.000000e+00> : vector<16xf32>
    %190 = vector.multi_reduction <add>, %66, %cst_89 [0] : vector<8x16xf32> to vector<16xf32>
    %c0_90 = arith.constant 0 : index
    %c0_91 = arith.constant 0 : index
    %c3 = arith.constant 3 : index
    %c0_92 = arith.constant 0 : index
    %191 = vector.load %arg8[%c0_90, %c0_91, %c3, %c0_92] : memref<1x1x4x16xf32, #tpu.memory_space<vmem>>, vector<1x1x1x16xf32>
    %192 = vector.shape_cast %191 : vector<1x1x1x16xf32> to vector<16xf32>
    %193 = vector.shape_cast %190 : vector<16xf32> to vector<1x1x1x16xf32>
    tpu.vector_store %arg8[%c0_90, %c0_91, %c3, %c0_92], %193 {strides = array<i32>} : memref<1x1x4x16xf32, #tpu.memory_space<vmem>>, vector<1x1x1x16xf32>,
    return
  }
  func.func @transform_0(%arg0: i32, %arg1: i32) -> (i32, i32, i32, i32) {
    %c0_i32 = arith.constant 0 : i32
    %c0_i32_0 = arith.constant 0 : i32
    %c0_i32_1 = arith.constant 0 : i32
    return %arg0, %c0_i32, %arg1, %c0_i32_0 : i32, i32, i32, i32
  }
  func.func @transform_1(%arg0: i32, %arg1: i32) -> (i32, i32, i32, i32) {
    %c0_i32 = arith.constant 0 : i32
    %c0_i32_0 = arith.constant 0 : i32
    %c0_i32_1 = arith.constant 0 : i32
    return %arg0, %c0_i32, %arg1, %c0_i32_0 : i32, i32, i32, i32
  }
  func.func @transform_2(%arg0: i32, %arg1: i32) -> (i32, i32, i32, i32) {
    %c1_i32 = arith.constant 1 : i32
    %0 = arith.muli %arg1, %c1_i32 : i32
    %c1_i32_0 = arith.constant 1 : i32
    %1 = arith.subi %0, %c1_i32_0 : i32
    %c0_i32 = arith.constant 0 : i32
    %2 = arith.maxsi %1, %c0_i32 : i32
    %c0_i32_1 = arith.constant 0 : i32
    %c0_i32_2 = arith.constant 0 : i32
    %c0_i32_3 = arith.constant 0 : i32
    return %arg0, %c0_i32_1, %2, %c0_i32_2 : i32, i32, i32, i32
  }
  func.func @transform_3(%arg0: i32, %arg1: i32) -> (i32, i32, i32, i32) {
    %c1_i32 = arith.constant 1 : i32
    %0 = arith.muli %arg1, %c1_i32 : i32
    %c1_i32_0 = arith.constant 1 : i32
    %1 = arith.subi %0, %c1_i32_0 : i32
    %c0_i32 = arith.constant 0 : i32
    %2 = arith.maxsi %1, %c0_i32 : i32
    %c0_i32_1 = arith.constant 0 : i32
    %c0_i32_2 = arith.constant 0 : i32
    %c0_i32_3 = arith.constant 0 : i32
    return %arg0, %c0_i32_1, %2, %c0_i32_2 : i32, i32, i32, i32
  }
  func.func @transform_4(%arg0: i32, %arg1: i32) -> (i32, i32, i32, i32) {
    %c1_i32 = arith.constant 1 : i32
    %0 = arith.addi %arg1, %c1_i32 : i32
    %c1_i32_0 = arith.constant 1 : i32
    %1 = arith.muli %0, %c1_i32_0 : i32
    %c1_i32_1 = arith.constant 1 : i32
    %2 = arith.minsi %1, %c1_i32_1 : i32
    %c0_i32 = arith.constant 0 : i32
    %c0_i32_2 = arith.constant 0 : i32
    %c0_i32_3 = arith.constant 0 : i32
    return %arg0, %c0_i32, %2, %c0_i32_2 : i32, i32, i32, i32
  }
  func.func @transform_5(%arg0: i32, %arg1: i32) -> (i32, i32, i32, i32) {
    %c1_i32 = arith.constant 1 : i32
    %0 = arith.addi %arg1, %c1_i32 : i32
    %c1_i32_0 = arith.constant 1 : i32
    %1 = arith.muli %0, %c1_i32_0 : i32
    %c1_i32_1 = arith.constant 1 : i32
    %2 = arith.minsi %1, %c1_i32_1 : i32
    %c0_i32 = arith.constant 0 : i32
    %c0_i32_2 = arith.constant 0 : i32
    %c0_i32_3 = arith.constant 0 : i32
    return %arg0, %c0_i32, %2, %c0_i32_2 : i32, i32, i32, i32
  }
  func.func @transform_6(%arg0: i32, %arg1: i32) -> (i32, i32, i32, i32) {
    %c0_i32 = arith.constant 0 : i32
    %c0_i32_0 = arith.constant 0 : i32
    %c0_i32_1 = arith.constant 0 : i32
    return %arg0, %arg1, %c0_i32, %c0_i32_0 : i32, i32, i32, i32
  }
}

</mosaic_0001>

<bundles_post_ra>
// kernel: tpu_custom_call.1
= control target key start
LH: loop header
LB: loop body
LE: loop exit
PB: predicated region body
PF: predicated region fallthrough
CT: control target
= control target key end

     0   :  { %s2273_s0 = inlined_call_operand.hbm [shape: bf16[2,1,16,16], index: 0, kind: input, shape index: {}]   ;;  %s2274_s1 = inlined_call_operand.hbm [shape: f32[2,1,16,16], index: 1, kind: input, shape index: {}]   ;;  %s2275_s2 = inlined_call_operand.hbm [shape: bf16[2,1,16,16], index: 2, kind: input, shape index: {}]   ;;  %s2276_s3 = inlined_call_operand.hbm [shape: f32[2,1,16,16], index: 3, kind: input, shape index: {}]   ;;  %s2277_s4 = inlined_call_operand.hbm [shape: bf16[2,1,16,16], index: 4, kind: input, shape index: {}]   ;;  %s2278_s5 = inlined_call_operand.hbm [shape: f32[2,1,16,16], index: 5, kind: input, shape index: {}]   ;;  %s2279_s6 = inlined_call_operand.hbm [shape: f32[2,2,4,16], index: 6, kind: output, shape index: {}]  }
   0x1   :  { %2311 = sst [smem:[#allocation35_spill]] %s2274_s1 }
   0x2   :  { %2312 = sst [smem:[#allocation36_spill]] %s2276_s3 }
   0x3   :  { %2313 = sst [smem:[#allocation37_spill]] %s2278_s5 }
   0x4   :  { %2314 = sst [smem:[#allocation38_spill]] %s2279_s6 }
   0x5   :  { %11 = vsyncpa [#allocation3], 0 }
   0x6   :  { %13 = vsyncpa [#allocation3 + $0x1], 0 }
   0x7   :  { %14 = vsyncpa [#allocation6], 0 }
   0x8   :  { %16 = vsyncpa [#allocation6 + $0x1], 0 }
   0x9   :  { %17 = vsyncpa [#allocation9], 0 }
   0xa   :  { %19 = vsyncpa [#allocation9 + $0x1], 0 }
   0xb   :  { %20 = vsyncpa [#allocation12], 0 }
   0xc   :  { %22 = vsyncpa [#allocation12 + $0x1], 0 }
   0xd   :  { %23 = vsyncpa [#allocation4], 0 }
   0xe   :  { %25 = vsyncpa [#allocation4 + $0x1], 0  ;;  %s1617_s21 = smov 0   ;;  %s1619_s22 = smov 0  }
   0xf   :  { %s1621_s23 = smov 0   ;;  %s1623_s24 = smov 0  }
  0x10   :  { %s1625_s25 = smov 0   ;;  %s1627_s26 = smov 0  }
  0x11   :  { %s1629_s27 = smov 0   ;;  %s1631_s28 = smov 0  }
  0x12   :  { %s1633_s29 = smov 0   ;;  %s1635_s30 = smov 0  }
  0x13   :  { %s1637_s7 = smov 0   ;;  %s1639_s8 = smov 0  }
  0x14   :  { %s1641_s9 = smov 0   ;;  %s1643_s10 = smov 0  }
  0x15 LB: > { %2315 = sst [smem:[#allocation21_spill]] %s1532_s25  ;;  %s1688_s11 = sadd.s32 4294967295, %s1568_s10   ;;  %s1568_s10 = sphi %s1643_s10, %s31_s10   ;;  %s1564_s9 = sphi %s1641_s9, %s2394_s9   ;;  %s1560_s8 = sphi %s1639_s8, %s2383_s8   ;;  %s1556_s7 = sphi %s1637_s7, %s2393_s7   ;;  %s1552_s30 = sphi %s1635_s30, %s2382_s30   ;;  %s1548_s29 = sphi %s1633_s29, %s2381_s29   ;;  %s1544_s28 = sphi %s1631_s28, %s2392_s28   ;;  %s1540_s27 = sphi %s1629_s27, %s2379_s27   ;;  %s1536_s26 = sphi %s1627_s26, %s2391_s26   ;;  %s1532_s25 = sphi %s1625_s25, %s2390_s25   ;;  %s1528_s24 = sphi %s1623_s24, %s2389_s24   ;;  %s1524_s23 = sphi %s1621_s23, %s2388_s23   ;;  %s1520_s22 = sphi %s1619_s22, %s2387_s22   ;;  %s1516_s21 = sphi %s1617_s21, %s2386_s21  }
  0x16   : > { %2316 = sst [smem:[#allocation22_spill]] %s1540_s27  ;;  %s1007_s12 = sadd.s32 4294967294, %s1568_s10  }
  0x17   : > { %2317 = sst [smem:[#allocation23_spill]] %s1544_s28  ;;  %s40_s13 = sadd.s32 1, %s1560_s8 }
  0x18   : > { %2318 = sst [smem:[#allocation24_spill]] %s1548_s29  ;;  %s43_s14 = sadd.s32 1, %s1564_s9 }
  0x19   : > { %2319 = sst [smem:[#allocation25_spill]] %s1552_s30  ;;  %p41_p0 = scmp.ge.s32.totalorder %s40_s13, 2 }
  0x1a   : > { %2320 = sst [smem:[#allocation26_spill]] %s1556_s7  ;;  %p59_p1 = scmp.ne.s32.totalorder %s1548_s29, %s1544_s28 }
  0x1b   : > { %2321 = sst [smem:[#allocation27_spill]] %s1560_s8  ;;  %p2292_p2 = scmp.eq.s32.totalorder %s1568_s10, 0 }
  0x1c   : > { %s2396_s13 = smov (%p41_p0, %s40_s13), 0  ;;  %s2398_s14 = smov (!%p41_p0, %s43_s14), %s1564_s9 }
  0x1d   : > { %2322 = sst [smem:[#allocation28_spill]] %s2396_s13  ;;  %p1706_p3 = por %p2292_p2, %p59_p1 }
  0x1e   : > { %p65_p4 = scmp.ne.s32.totalorder %s1544_s28, %s1540_s27  ;;  %p2291_p5 = scmp.eq.s32.totalorder %s1688_s11, 0 }
  0x1f   : > { %p255_p6 = scmp.eq.s32.totalorder %s1688_s11, 3  ;;  %p261_p7 = scmp.eq.s32.totalorder %s1007_s12, 3 }
  0x20   : > { %p1716_p8 = por %p2291_p5, %p65_p4  ;;  %p2290_p11 = scmp.lt.s32.totalorder %s1568_s10, 4 }
  0x21   : > { %p1720_p9 = por %p255_p6, %p59_p1  ;;  %p1724_p10 = por %p261_p7, %p65_p4 }
  0x22   : > { %s2324_s18 = scalar_select %p1716_p8, 1, 0 }
  0x23   : > { %s2326_s19 = scalar_select %p1720_p9, 1, 0 }
  0x24   : > { %2325 = sst [smem:[#allocation29_spill]] %s2324_s18  ;;  %s1730_s15 = sand.u32 1, %s1548_s29  }
  0x25   : > { %2327 = sst [smem:[#allocation30_spill]] %s2326_s19  ;;  %s1015_s16 = sshll.u32 %s1564_s9, 1 }
  0x26   : > { %s2328_s20 = scalar_select %p1724_p10, 1, 0 }
  0x27   : > { %s2293_s12 = sand.u32 1, %s1568_s10   ;;  %s1735_s27 = sadd.s32 %s1560_s8, %s1015_s16 }
  0x28   : > { %2329 = sst [smem:[#allocation31_spill]] %s2328_s20  ;;  %p1741_p12 = pnand %p2290_p11, %p1706_p3 }
  0x29   : > { %s1017_s19 = sshll.u32 %s1730_s15, 3  ;;  %s1019_s7 = sshll.u32 %s1735_s27, 7 }
  0x2a   : > { %s305_s20 = scalar_lea.vmem [#allocation5], %s1017_s19  ;;  %s2331_s1 = sld [smem:[#allocation35_spill]] }
  0x2b   : > { %s314_s30 = sshll.u32 %s305_s20, 4  ;;  %s1756_s16 = scalar_lea.sflag [#allocation6], %s2293_s12  ;;  %s1752_s30 = int_to_ptr.vmem [resolvable:$true] %s314_s30 }
  0x2c   : > { %p2304_p0 = pneg %p1741_p12 }
  0x30   : > { %s1750_s5 = scalar_lea.hbm %s2331_s1, %s1019_s7  ;;  %s1219_s18 = scalar_lea.hbm %s2331_s1, 512 }
  0x31   : > { %s1214_s17 = scalar_lea.hbm %s1750_s5, 128  ;;  %p1220_p4 = scmp.lt.u32.totalorder %s1750_s5, %s2331_s1 }
  0x32   : > { %p1215_p13 = scmp.ne.s32.totalorder %s1750_s5, %s1214_s17  ;;  %p1221_p6 = scmp.lt.u32.totalorder %s1219_s18, %s1214_s17 }
  0x33   : > { %p1223_p11 = scmp.lt.u32.totalorder %s1214_s17, %s1750_s5 }
  0x34   : > { %p1217_p1 = pnand %p2304_p0, %p1215_p13  ;;  %p1222_p7 = por %p1221_p6, %p1220_p4 }
  0x36   : > { %p1218_p3 = pneg %p1217_p1  ;;  %p1224_p5 = por %p1223_p11, %p1222_p7 }
  0x38   : > { %p1225_p2 = pnand %p1224_p5, %p1218_p3 }
  0x3a   : > { %1228 = shalt.err (!%p1225_p2)
}
  0x3b   : > { %s1229_s12 = scalar_lea.vmem %s1752_s30, 128  ;;  %s1570_s28 = smov [#allocation5]  }
  0x3c   : > { %p1230_p13 = scmp.ne.s32.totalorder %s1752_s30, %s1229_s12  ;;  %s1234_s7 = sshll.u32 %s1570_s28, 4  ;;  %s1235_s7 = int_to_ptr.vmem [resolvable:$false] %s1234_s7 }
  0x3d   : > { %s1236_s19 = scalar_lea.vmem %s1235_s7, 256  ;;  %p1237_p9 = scmp.lt.s32.totalorder %s1752_s30, %s1235_s7 }
  0x3e   : > { %p1232_p1 = pnand %p1230_p13, %p2304_p0  ;;  %p1238_p4 = scmp.lt.s32.totalorder %s1236_s19, %s1229_s12 }
  0x40   : > { %p1233_p10 = pneg %p1232_p1  ;;  %p1239_p6 = por %p1238_p4, %p1237_p9 }
  0x42   : > { %p1240_p11 = pnand %p1239_p6, %p1233_p10 }
  0x44   : > { %1243 = shalt.err (!%p1240_p11)
}
  0x45   : > { %1068 = dma.hbm_to_vmem [thread:$0]  (!%p1741_p12), %s1750_s5, 128, %s1752_s30, %s1756_s16  }
  0x46   : > { %p1034_p2 = scmp.ge.s32.totalorder %s1568_s10, 1  ;;  %p411_p5 = scmp.lt.s32.totalorder %s1568_s10, 5 }
  0x47   : > { %p45_p10 = scmp.ge.s32.totalorder %s2398_s14, 2  ;;  %s114_s5 = sadd.s32 1, %s1536_s26 }
  0x48   : > { %p1786_p9 = pnand %p1034_p2, %p411_p5  ;;  %s2334_s30 = ssub.s32 %s1560_s8, %s2396_s13 }
  0x49   : > { %s2400_s14 = smov (%p45_p10, %s2398_s14), 0  ;;  %p121_p3 = scmp.ne.s32.totalorder %s1536_s26, %s1532_s25 }
  0x4a   : > { %s2332_s12 = scalar_select %p1786_p9, 1, 0 }
  0x4b   : > { %2333 = sst [smem:[#allocation32_spill]] %s2400_s14  ;;  %s1796_s17 = ssub.s32 %s1564_s9, %s2400_s14 }
  0x4c   : > { %s49_s18 = sor.u32 %s2334_s30, %s1796_s17  ;;  %p127_p13 = scmp.ne.s32.totalorder %s1532_s25, %s1528_s24 }
  0x4d   : > { %p50_p7 = scmp.eq.s32.totalorder %s49_s18, 0  ;;  %s2335_s20 = sadd.s32 1, %s1548_s29 }
  0x4e   : > { %p2337_p1 = scmp.eq.s32.totalorder %s1568_s10, 0  ;;  %p2338_p6 = scmp.eq.s32.totalorder %s1688_s11, 0 }
  0x4f   : > { %s1810_s28 = scalar_select %p50_p7, %s1548_s29, %s2335_s20  }
  0x50   : > { %p123_p4 = por %p121_p3, %p2337_p1  ;;  %p1816_p11 = por %p127_p13, %p2338_p6 }
  0x51   : > { %2336 = sst [smem:[#allocation33_spill]] %s1810_s28  ;;  %s323_s19 = sand.u32 1, %s1536_s26  }
  0x52   : > { %s2339_s7 = scalar_select %p1816_p11, 1, 0 }
  0x53   : > { %s1821_s1 = sshll.u32 %s323_s19, 2  ;;  %p2303_p2 = scmp.eq.s32.totalorder %s1796_s17, 0 }
  0x54   : > { %2340 = sst [smem:[#allocation34_spill]] %s2339_s7  ;;  %p2341_p5 = scmp.lt.s32.totalorder %s1568_s10, 4 }
  0x55   : > { %s1834_s24 = scalar_select %p2303_p2, %s1536_s26, %s114_s5  }
  0x56   : > { %p1827_p10 = pnand %p2341_p5, %p123_p4  ;;  %s1024_s18 = sshll.u32 %s323_s19, 3 }
  0x57   : > { %s2302_s20 = sshll.u32 %s1564_s9, 8  ;;  %s2343_s3 = sld [smem:[#allocation36_spill]] }
  0x58   : > { %s2342_s30 = scalar_select %p1827_p10, 1, 0 }
  0x59   : > { %s348_s14 = scalar_lea.vmem [#allocation8], %s1024_s18  ;;  %s2344_s7 = sand.u32 1, %s1568_s10  }
  0x5a   : > { %s360_s29 = sshll.u32 %s348_s14, 4  ;;  %s1848_s25 = scalar_lea.sflag [#allocation9], %s2344_s7  ;;  %s1844_s29 = int_to_ptr.vmem [resolvable:$true] %s360_s29 }
  0x5b   : > { %p2307_p7 = pneg %p1827_p10 }
  0x5d   : > { %s1842_s28 = scalar_lea.hbm %s2343_s3, %s2302_s20  ;;  %s1249_s19 = scalar_lea.hbm %s2343_s3, 512 }
  0x5e   : > { %s1244_s5 = scalar_lea.hbm %s1842_s28, 128  ;;  %p1250_p4 = scmp.lt.u32.totalorder %s1842_s28, %s2343_s3 }
  0x5f   : > { %p1245_p3 = scmp.ne.s32.totalorder %s1842_s28, %s1244_s5  ;;  %p1251_p6 = scmp.lt.u32.totalorder %s1249_s19, %s1244_s5 }
  0x60   : > { %p1253_p2 = scmp.lt.u32.totalorder %s1244_s5, %s1842_s28 }
  0x61   : > { %p1247_p13 = pnand %p2307_p7, %p1245_p3  ;;  %p1252_p5 = por %p1251_p6, %p1250_p4 }
  0x63   : > { %p1248_p1 = pneg %p1247_p13  ;;  %p1254_p0 = por %p1253_p2, %p1252_p5 }
  0x65   : > { %p1255_p11 = pnand %p1254_p0, %p1248_p1 }
  0x67   : > { %1258 = shalt.err (!%p1255_p11)
}
  0x68   : > { %s1259_s14 = scalar_lea.vmem %s1844_s29, 128  ;;  %s1571_s7 = smov [#allocation8]  }
  0x69   : > { %p1260_p3 = scmp.ne.s32.totalorder %s1844_s29, %s1259_s14  ;;  %s1264_s8 = sshll.u32 %s1571_s7, 4  ;;  %s1265_s8 = int_to_ptr.vmem [resolvable:$false] %s1264_s8 }
  0x6a   : > { %s1266_s20 = scalar_lea.vmem %s1265_s8, 256  ;;  %p1267_p9 = scmp.lt.s32.totalorder %s1844_s29, %s1265_s8 }
  0x6b   : > { %p1262_p13 = pnand %p1260_p3, %p2307_p7  ;;  %p1268_p4 = scmp.lt.s32.totalorder %s1266_s20, %s1259_s14 }
  0x6d   : > { %p1263_p8 = pneg %p1262_p13  ;;  %p1269_p6 = por %p1268_p4, %p1267_p9 }
  0x6f   : > { %p1270_p2 = pnand %p1269_p6, %p1263_p8 }
  0x71   : > { %1273 = shalt.err (!%p1270_p2)
}
  0x72   : > { %1074 = dma.hbm_to_vmem [thread:$0]  (!%p1827_p10), %s1842_s28, 128, %s1844_s29, %s1848_s25  }
  0x73   : > { %s1014_s5 = sshll.u32 %s1730_s15, 2  ;;  %s1016_s13 = sshll.u32 %s1735_s27, 6 }
  0x74   : > { %s1881_s7 = scalar_lea.hbm %s2273_s0, %s1016_s13  ;;  %s285_s14 = scalar_lea.vmem [#allocation2], %s1014_s5 }
  0x75   : > { %s294_s8 = sshll.u32 %s285_s14, 4  ;;  %s282_s20 = scalar_lea.sflag [#allocation3], %s1730_s15  ;;  %s295_s8 = int_to_ptr.vmem [resolvable:$true] %s294_s8 }
  0x76   : > { %s1274_s3 = scalar_lea.hbm %s1881_s7, 64  ;;  %p2345_p0 = pneg %p1741_p12 }
  0x77   : > { %p1275_p8 = scmp.ne.s32.totalorder %s1881_s7, %s1274_s3  ;;  %s1279_s28 = scalar_lea.hbm %s2273_s0, 256 }
  0x78   : > { %p1280_p1 = scmp.lt.u32.totalorder %s1881_s7, %s2273_s0  ;;  %p1281_p5 = scmp.lt.u32.totalorder %s1279_s28, %s1274_s3 }
  0x79   : > { %p1277_p9 = pnand %p1275_p8, %p2345_p0  ;;  %p1283_p13 = scmp.lt.u32.totalorder %s1274_s3, %s1881_s7 }
  0x7a   : > { %p1282_p3 = por %p1281_p5, %p1280_p1 }
  0x7b   : > { %p1278_p11 = pneg %p1277_p9 }
  0x7c   : > { %p1284_p4 = por %p1283_p13, %p1282_p3 }
  0x7e   : > { %p1285_p6 = pnand %p1284_p4, %p1278_p11 }
  0x80   : > { %1288 = shalt.err (!%p1285_p6)
}
  0x81   : > { %s1289_s15 = scalar_lea.vmem %s295_s8, 64  ;;  %p2346_p8 = pmov %p2345_p0 }
  0x82   : > { %p1290_p2 = scmp.ne.s32.totalorder %s295_s8, %s1289_s15  ;;  %s1572_s5 = smov [#allocation2]  }
  0x83   : > { %s1294_s18 = sshll.u32 %s1572_s5, 4  ;;  %s1295_s18 = int_to_ptr.vmem [resolvable:$false] %s1294_s18 }
  0x84   : > { %p1292_p0 = pnand %p1290_p2, %p2346_p8  ;;  %s1296_s14 = scalar_lea.vmem %s1295_s18, 128 }
  0x85   : > { %p1297_p7 = scmp.lt.s32.totalorder %s295_s8, %s1295_s18  ;;  %p1298_p10 = scmp.lt.s32.totalorder %s1296_s14, %s1289_s15 }
  0x86   : > { %p1293_p9 = pneg %p1292_p0 }
  0x87   : > { %p1299_p1 = por %p1298_p10, %p1297_p7 }
  0x89   : > { %p1300_p5 = pnand %p1299_p1, %p1293_p9 }
  0x8b   : > { %1303 = shalt.err (!%p1300_p5)
}
  0x8c   : > { %1065 = dma.hbm_to_vmem [thread:$0]  (!%p1741_p12), %s1881_s7, 64, %s295_s8, %s282_s20  }
  0x8d   : > { %s2347_s3 = sshll.u32 %s1564_s9, 7  ;;  %s325_s13 = scalar_lea.vmem [#allocation7], %s1821_s1 }
  0x8e   : > { %s1908_s28 = scalar_lea.hbm %s2275_s2, %s2347_s3  ;;  %s337_s19 = sshll.u32 %s325_s13, 4  ;;  %s338_s19 = int_to_ptr.vmem [resolvable:$true] %s337_s19 }
  0x8f   : > { %s1304_s15 = scalar_lea.hbm %s1908_s28, 64  ;;  %p2348_p7 = scmp.ne.s32.totalorder %s2342_s30, 0 }
  0x90   : > { %p1305_p10 = scmp.ne.s32.totalorder %s1908_s28, %s1304_s15  ;;  %s1309_s8 = scalar_lea.hbm %s2275_s2, 256 }
  0x91   : > { %p2349_p11 = pneg %p2348_p7  ;;  %p1310_p12 = scmp.lt.u32.totalorder %s1908_s28, %s2275_s2 }
  0x92   : > { %p1311_p4 = scmp.lt.u32.totalorder %s1309_s8, %s1304_s15  ;;  %p1313_p2 = scmp.lt.u32.totalorder %s1304_s15, %s1908_s28 }
  0x93   : > { %p1307_p3 = pnand %p1305_p10, %p2349_p11 }
  0x94   : > { %p1312_p6 = por %p1311_p4, %p1310_p12 }
  0x95   : > { %p1308_p13 = pneg %p1307_p3 }
  0x96   : > { %p1314_p8 = por %p1313_p2, %p1312_p6 }
  0x98   : > { %p1315_p0 = pnand %p1314_p8, %p1308_p13 }
  0x9a   : > { %1318 = shalt.err (!%p1315_p0)
}
  0x9b   : > { %s1319_s1 = scalar_lea.vmem %s338_s19, 64  ;;  %p2350_p1 = pmov %p2349_p11 }
  0x9c   : > { %p1320_p9 = scmp.ne.s32.totalorder %s338_s19, %s1319_s1  ;;  %s1573_s18 = smov [#allocation7]  }
  0x9d   : > { %s1324_s14 = sshll.u32 %s1573_s18, 4  ;;  %s1325_s14 = int_to_ptr.vmem [resolvable:$false] %s1324_s14 }
  0x9e   : > { %p1322_p5 = pnand %p1320_p9, %p2350_p1  ;;  %s1326_s3 = scalar_lea.vmem %s1325_s14, 128 }
  0x9f   : > { %p1327_p11 = scmp.lt.s32.totalorder %s338_s19, %s1325_s14  ;;  %p1328_p3 = scmp.lt.s32.totalorder %s1326_s3, %s1319_s1 }
  0xa0   : > { %p1323_p10 = pneg %p1322_p5 }
  0xa1   : > { %p1329_p4 = por %p1328_p3, %p1327_p11 }
  0xa3   : > { %p1330_p12 = pnand %p1329_p4, %p1323_p10 }
  0xa5   : > { %1333 = shalt.err (!%p1330_p12)
}
  0xa6   : > { %1071 = dma.hbm_to_vmem [thread:$0]  (!%p2348_p7), %s1908_s28, 64, %s338_s19, %s1756_s16  }
  0xa7   : > { %s182_s27 = sadd.s32 1, %s1524_s23  ;;  %p189_p13 = scmp.ne.s32.totalorder %s1524_s23, %s1520_s22 }
  0xa8   : > { %p195_p6 = scmp.ne.s32.totalorder %s1520_s22, %s1516_s21  ;;  %s1937_s30 = sand.u32 1, %s1524_s23  }
  0xa9   : > { %p2351_p2 = scmp.eq.s32.totalorder %s1568_s10, 0  ;;  %p2352_p0 = scmp.eq.s32.totalorder %s1688_s11, 0 }
  0xaa   : > { %s1028_s13 = sshll.u32 %s1937_s30, 2  ;;  %s2354_s15 = sshll.u32 %s1564_s9, 7 }
  0xab   : > { %p191_p8 = por %p189_p13, %p2351_p2  ;;  %p1943_p9 = por %p195_p6, %p2352_p0 }
  0xac   : > { %s1509_s6 = sadd.s32 64, %s2354_s15  ;;  %s371_s7 = scalar_lea.vmem [#allocation10], %s1028_s13 }
  0xad   : > { %s2353_s29 = scalar_select %p1943_p9, 1, 0 }
  0xae   : > { %s383_s16 = sshll.u32 %s371_s7, 4  ;;  %p2355_p7 = scmp.eq.s32.totalorder %s1796_s17, 0  ;;  %s1960_s16 = int_to_ptr.vmem [resolvable:$true] %s383_s16 }
  0xaf   : > { %s1958_s8 = scalar_lea.hbm %s2277_s4, %s1509_s6  ;;  %p2356_p1 = scmp.lt.s32.totalorder %s1568_s10, 4 }
  0xb0   : > { %s1953_s28 = scalar_select %p2355_p7, %s1524_s23, %s182_s27  }
  0xb1   : > { %p1964_p5 = pnand %p2356_p1, %p191_p8  ;;  %s1031_s17 = sshll.u32 %s1937_s30, 3 }
  0xb2   : > { %s2358_s5 = sshll.u32 %s1564_s9, 8  ;;  %s1334_s18 = scalar_lea.hbm %s1958_s8, 64 }
  0xb3   : > { %s1971_s1 = sadd.s32 128, %s2358_s5  ;;  %p1335_p10 = scmp.ne.s32.totalorder %s1958_s8, %s1334_s18 }
  0xb4   : > { %p1336_p11 = pneg %p1964_p5  ;;  %s1339_s27 = scalar_lea.hbm %s2277_s4, 256 }
  0xb5   : > { %p1340_p12 = scmp.lt.u32.totalorder %s1958_s8, %s2277_s4  ;;  %p1341_p13 = scmp.lt.u32.totalorder %s1339_s27, %s1334_s18 }
  0xb6   : > { %p1337_p3 = pnand %p1336_p11, %p1335_p10  ;;  %p1343_p2 = scmp.lt.u32.totalorder %s1334_s18, %s1958_s8 }
  0xb7   : > { %p1342_p6 = por %p1341_p13, %p1340_p12 }
  0xb8   : > { %p1338_p4 = pneg %p1337_p3 }
  0xb9   : > { %p1344_p8 = por %p1343_p2, %p1342_p6 }
  0xbb   : > { %p1345_p0 = pnand %p1344_p8, %p1338_p4 }
  0xbd   : > { %1348 = shalt.err (!%p1345_p0)
}
  0xbe   : > { %s1349_s6 = scalar_lea.vmem %s1960_s16, 64  ;;  %s1574_s7 = smov [#allocation10]  }
  0xbf   : > { %p1350_p7 = scmp.ne.s32.totalorder %s1960_s16, %s1349_s6  ;;  %s1354_s21 = sshll.u32 %s1574_s7, 4  ;;  %s1355_s21 = int_to_ptr.vmem [resolvable:$false] %s1354_s21 }
  0xc0   : > { %s1356_s19 = scalar_lea.vmem %s1355_s21, 128  ;;  %p1357_p3 = scmp.lt.s32.totalorder %s1960_s16, %s1355_s21 }
  0xc1   : > { %p1352_p1 = pnand %p1350_p7, %p1336_p11  ;;  %p1358_p12 = scmp.lt.s32.totalorder %s1356_s19, %s1349_s6 }
  0xc3   : > { %p1353_p10 = pneg %p1352_p1  ;;  %p1359_p13 = por %p1358_p12, %p1357_p3 }
  0xc5   : > { %p1360_p6 = pnand %p1359_p13, %p1353_p10 }
  0xc7   : > { %1363 = shalt.err (!%p1360_p6)
}
  0xc8   : > { %1077 = dma.hbm_to_vmem [thread:$0]  (!%p1964_p5), %s1958_s8, 64, %s1960_s16, %s1848_s25  }
  0xc9   : > { %s2359_s14 = sld [smem:[#allocation37_spill]]  ;;  %s394_s27 = scalar_lea.vmem [#allocation11], %s1031_s17 }
  0xca   : > { %s406_s13 = sshll.u32 %s394_s27, 4  ;;  %s391_s15 = scalar_lea.sflag [#allocation12], %s1937_s30  ;;  %s407_s13 = int_to_ptr.vmem [resolvable:$true] %s406_s13 }
  0xcf   : > { %s2003_s3 = scalar_lea.hbm %s2359_s14, %s1971_s1  ;;  %s1369_s8 = scalar_lea.hbm %s2359_s14, 512 }
  0xd0   : > { %s1364_s6 = scalar_lea.hbm %s2003_s3, 128  ;;  %p1370_p0 = scmp.lt.u32.totalorder %s2003_s3, %s2359_s14 }
  0xd1   : > { %p1365_p4 = scmp.ne.s32.totalorder %s2003_s3, %s1364_s6  ;;  %p1371_p7 = scmp.lt.u32.totalorder %s1369_s8, %s1364_s6 }
  0xd2   : > { %p1373_p10 = scmp.lt.u32.totalorder %s1364_s6, %s2003_s3 }
  0xd3   : > { %p1367_p2 = pnand %p1365_p4, %p1336_p11  ;;  %p1372_p1 = por %p1371_p7, %p1370_p0 }
  0xd5   : > { %p1368_p8 = pneg %p1367_p2  ;;  %p1374_p3 = por %p1373_p10, %p1372_p1 }
  0xd7   : > { %p1375_p12 = pnand %p1374_p3, %p1368_p8 }
  0xd9   : > { %1378 = shalt.err (!%p1375_p12)
}
  0xda   : > { %s1379_s30 = scalar_lea.vmem %s407_s13, 128  ;;  %s1575_s17 = smov [#allocation11]  }
  0xdb   : > { %p1380_p13 = scmp.ne.s32.totalorder %s407_s13, %s1379_s30  ;;  %s1384_s21 = sshll.u32 %s1575_s17, 4  ;;  %s1385_s21 = int_to_ptr.vmem [resolvable:$false] %s1384_s21 }
  0xdc   : > { %s1386_s19 = scalar_lea.vmem %s1385_s21, 256  ;;  %p1387_p2 = scmp.lt.s32.totalorder %s407_s13, %s1385_s21 }
  0xdd   : > { %p1382_p6 = pnand %p1380_p13, %p1336_p11  ;;  %p1388_p9 = scmp.lt.s32.totalorder %s1386_s19, %s1379_s30 }
  0xdf   : > { %p1383_p4 = pneg %p1382_p6  ;;  %p1389_p0 = por %p1388_p9, %p1387_p2 }
  0xe1   : > { %p1390_p7 = pnand %p1389_p0, %p1383_p4 }
  0xe3   : > { %1393 = shalt.err (!%p1390_p7)
}
  0xe4   : > { %1080 = dma.hbm_to_vmem [thread:$0]  (!%p1964_p5), %s2003_s3, 128, %s407_s13, %s391_s15  }
  0xe5   : > { %p2360_p8 = scmp.ne.s32.totalorder %s2332_s12, 0 }
  0xe6   : > { %s2361_s5 = sld [smem:[#allocation23_spill]] (!%p2360_p8)  ;;  %s2362_s18 = sld [smem:[#allocation29_spill]] (!%p2360_p8) }
  0xe7   : > { %415 = sbr.rel (%p2360_p8) target bundleno = 701 (0x2bd), region = 44 }
  0xec   : > { %s2030_s27 = sand.u32 (!%p2360_p8), 1, %s2361_s5   ;;  %p2363_p9 = scmp.ne.s32.totalorder (!%p2360_p8), %s2362_s18, 0 }
  0xed   : > { %s1035_s6 = sshll.u32 (!%p2360_p8), %s2030_s27, 2  ;;  %s418_s25 = scalar_lea.sflag (!%p2360_p8), [#allocation3], %s2030_s27 }
  0xee   : > { %s2036_s16 = scalar_lea.vmem [#allocation2], %s1035_s6 }
  0xef   : > { %1479 = dma.done.wait (%p2363_p9), %s418_s25, 64  }
  0xf0   : > { %1481 = vsyncadd (%p2363_p9), %s418_s25, 4294967232  ;;  %s426_s12 = sand.u32 1, %s1688_s11   ;;  %s1036_s20 = sshll.u32 %s2030_s27, 3 }
  0xf1   : > { %s427_s3 = scalar_lea.sflag [#allocation6], %s426_s12  ;;  %s430_s13 = scalar_lea.vmem [#allocation5], %s1036_s20 }
  0xf2   : > { %1483 = dma.done.wait (%p2363_p9), %s427_s3, 128  }
  0xf3   : > { %1485 = vsyncadd (%p2363_p9), %s427_s3, 4294967168  ;;  %s2364_s15 = sld [smem:[#allocation21_spill]]  ;;  %s2365_s8 = sld [smem:[#allocation34_spill]] }
  0xf9   : > { %s437_s1 = sand.u32 1, %s2364_s15   ;;  %p2366_p5 = scmp.ne.s32.totalorder %s2365_s8, 0 }
  0xfa   : > { %s2049_s7 = sshll.u32 %s437_s1, 2 }
  0xfb   : > { %s439_s30 = scalar_lea.vmem [#allocation7], %s2049_s7 }
  0xfc   : > { %1487 = dma.done.wait (%p2366_p5), %s427_s3, 64  }
  0xfd   : > { %1489 = vsyncadd (%p2366_p5), %s427_s3, 4294967232  ;;  %s1038_s11 = sshll.u32 %s437_s1, 3  ;;  %s445_s17 = scalar_lea.sflag [#allocation9], %s426_s12 }
  0xfe   : > { %s448_s21 = scalar_lea.vmem [#allocation8], %s1038_s11 }
  0xff   : > { %1491 = dma.done.wait (%p2366_p5), %s445_s17, 128  }
 0x100   : > { %1493 = vsyncadd (%p2366_p5), %s445_s17, 4294967168  ;;  %s455_s19 = sand.u32 1, %s1520_s22   ;;  %p2367_p11 = scmp.ne.s32.totalorder %s2353_s29, 0 }
 0x101   : > { %s1039_s5 = sshll.u32 %s455_s19, 2 }
 0x102   : > { %s457_s18 = scalar_lea.vmem [#allocation10], %s1039_s5 }
 0x103   : > { %1495 = dma.done.wait (%p2367_p11), %s445_s17, 64  }
 0x104   : > { %1497 = vsyncadd (%p2367_p11), %s445_s17, 4294967232  ;;  %s1040_s25 = sshll.u32 %s455_s19, 3  ;;  %s463_s20 = scalar_lea.sflag [#allocation12], %s455_s19 }
 0x105   : > { %s2065_s12 = scalar_lea.vmem [#allocation11], %s1040_s25 }
 0x106   : > { %1499 = dma.done.wait (%p2367_p11), %s463_s20, 128  }
 0x107   : > { %1501 = vsyncadd (%p2367_p11), %s463_s20, 4294967168  ;;  %s2368_s3 = sld [smem:[#allocation25_spill]]  ;;  %v2072_v1 = vld [vmem:[%s430_s13] sm:$0xff]  ;;  %v549_v2 = vld [vmem:[%s448_s21] sm:$0xff]  ;;  %s1576_s1 = smov 16   ;;  %vm592_vm0 = vcmask 1047680  }
 0x108   : > { %v532_v3 = vld [vmem:[%s2036_s16] sm:$0xf]  ;;  %593 = vrot.lane.b32.xlu1 %v2072_v1, %s1576_s1  ;;  %v555_v6 = vld [vmem:[%s439_s30] sm:$0xf]  ;;  %v562_v7 = vld [vmem:[%s457_s18] sm:$0xf] }
 0x109   : > { %v2079_v5 = vunpack.c.l.bf16 %v532_v3  ;;  %v556_v8 = vunpack.c.l.bf16 %v555_v6  ;;  %v563_v9 = vunpack.c.l.bf16 %v562_v7  ;;  %v552_v25 = vld [vmem:[%s2065_s12] sm:$0xff]  ;;  %s1577_s13 = smov 113   ;;  %s1578_s7 = smov 127   ;;  %vm569_vm1 = vcmp.ne.f32.partialorder %v2072_v1, 255.0 }
 0x10a   : > { %v1579_v56 = vmov 0.0   ;;  %vm750_vm2 = vcmask 130048   ;;  %vm758_vm3 = vcmask 122880   ;;  %s2153_s30 = scalar_lea.vmem [#allocation13], %s1035_s6  ;;  %s2369_s6 = sld [smem:[#allocation26_spill]] }
 0x10b   : > { %v573_v11 = vmul.f32 0.5, %v2079_v5  ;;  %v557_v12 = vmul.f32 0.5, %v556_v8  ;;  %v564_v13 = vmul.f32 0.5, %v563_v9  ;;  %v583_v45 = vand.u32 2147483647, %v2079_v5  ;;  %s2370_s11 = sld [smem:[#allocation30_spill]] }
 0x10c   : > { %v1042_v57 = vsel %vm569_vm1, 1.0, %v1579_v56  ;;  %v580_v63 = vmax.f32 %v2079_v5, 0.0  ;;  %s802_s5 = sshll.u32 %s2153_s30, 4  ;;  %s2371_s20 = sld [smem:[#allocation38_spill]]  ;;  %s2195_s5 = int_to_ptr.vmem [resolvable:$true] %s802_s5 }
 0x10d   : > { %p543_p1 = scmp.gt.s32.totalorder %s2368_s3, 0  ;;  %1204 = vtanh.f32 %v573_v11  ;;  %p546_p10 = scmp.lt.s32.totalorder %s2368_s3, 1  ;;  %v584_v46 = vsub.f32 0.0, %v583_v45  ;;  %v572_v59 = vmul.f32 %v1042_v57, %v2072_v1 }
 0x10e   : > { %1206 = vtanh.f32 %v557_v12 }
 0x10f   : > { %s544_s15 = scalar_select %p543_p1, 1, 0  ;;  %1208 = vtanh.f32 %v564_v13  ;;  %v585_v47 = vmul.f32 1.442695, %v584_v46  ;;  %v578_v60 = vmul.f32 0.9, %v572_v59 }
 0x110   : > { %s547_s29 = scalar_select %p546_p10, 1, 0  ;;  %v778_v7 = vsel %vm750_vm2, %v572_v59, 0.0 }
 0x111   : > { %s545_s8 = scvt.s32.f32 %s544_s15  ;;  %1210 = vpow2.f32 %v585_v47  ;;  %v579_v61 = vadd.f32 0.05, %v578_v60  ;;  %s1044_s17 = sshll.u32 %s2369_s6, 1 }
 0x112   : > { %s548_s16 = scvt.s32.f32 %s547_s29  ;;  %s798_s21 = sadd.s32 %s2368_s3, %s1044_s17 }
 0x113   : > { %v550_v0 = vstv %s545_s8  ;;  %s1045_s19 = sshll.u32 %s798_s21, 6  ;;  %s787_s15 = scalar_lea.sflag [#allocation4], %s2030_s27 }
 0x114   : > { %v2077_v4 = vmul.f32 %v550_v0, %v549_v2  ;;  %v553_v24 = vstv %s548_s16  ;;  %s2193_s12 = scalar_lea.hbm %s2371_s20, %s1045_s19  ;;  %s1394_s8 = scalar_lea.vmem %s2195_s5, 64 }
 0x115   : > { %v2098_v28 = vmul.f32 %v553_v24, %v552_v25  ;;  %p1395_p3 = scmp.ne.s32.totalorder %s2195_s5, %s1394_s8  ;;  %p2372_p12 = scmp.ne.s32.totalorder %s2370_s11, 0 }
 0x116   : > { %v611_v10 = vrot.slane %v2077_v4, 7  ;;  %s1581_s3 = smov [#allocation13]  }
 0x117   : > { %v1205_v14 = vpop.eup %1204  ;;  %p1396_p13 = pnand %p1395_p3, %p2372_p12 }
 0x118   : > { %613 = vrot.lane.b32.xlu0 %v611_v10, %s1576_s1  ;;  %v1207_v15 = vpop.eup %1206  ;;  %v575_v16 = vadd.f32 1.0, %v1205_v14 }
 0x119   : > { %v1209_v17 = vpop.eup %1208  ;;  %v559_v18 = vadd.f32 1.0, %v1207_v15  ;;  %p1397_p6 = pneg %p1396_p13 }
 0x11a   : > { %v2085_v19 = vmul.f32 0.5, %v575_v16  ;;  %v566_v20 = vadd.f32 1.0, %v1209_v17 }
 0x11b   : > { %v560_v21 = vmul.f32 0.5, %v559_v18  ;;  %v1211_v52 = vpop.eup %1210 }
 0x11c   : > { %670 = vrot.lane.b32.xlu1 %v2085_v19, %s1576_s1  ;;  %v567_v22 = vmul.f32 0.5, %v566_v20  ;;  %v587_v54 = vadd.f32 1.0, %v1211_v52  ;;  %v577_v9 = vmul.f32 %v1042_v57, %v2085_v19 }
 0x11d   : > { %v2089_v23 = vmul.f32 %v560_v21, %v550_v0  ;;  %v581_v0 = vmul.f32 %v579_v61, %v2079_v5 }
 0x11e   : > { %v2092_v26 = vmul.f32 %v567_v22, %v553_v24  ;;  %1212 = vlog2.f32 %v587_v54  ;;  %v760_v12 = vmul.f32 %v577_v9, %v572_v59  ;;  %v769_v13 = vadd.f32 %v577_v9, %v572_v59 }
 0x11f   : > { %v688_v27 = vrot.slane %v2089_v23, 7  ;;  %v582_v3 = vsub.f32 %v580_v63, %v581_v0 }
 0x120   : > { %713 = vrot.lane.b32.xlu1 %v2092_v26, %s1576_s1  ;;  %v761_v14 = vsel %vm750_vm2, %v760_v12, 0.0  ;;  %v770_v15 = vsel %vm750_vm2, %v769_v13, 0.0 }
 0x121   : > { %690 = vrot.lane.b32.xlu0 %v688_v27, %s1576_s1  ;;  %v762_v16 = vrot.slane %v761_v14, 4  ;;  %v771_v17 = vrot.slane %v770_v15, 4 }
 0x123   : > { %v763_v20 = vadd.f32 %v762_v16, %v761_v14  ;;  %v772_v21 = vadd.f32 %v771_v17, %v770_v15 }
 0x125   : > { %636 = vrot.lane.b32.xlu0 %v2098_v28, %s1576_s1  ;;  %v764_v22 = vrot.slane %v763_v20, 2  ;;  %v773_v24 = vrot.slane %v772_v21, 2 }
 0x127   : > { %v765_v25 = vadd.f32 %v764_v22, %v763_v20 }
 0x128   : > { %v1213_v2 = vpop.eup %1212 }
 0x129   : > { %v589_v6 = vmul.f32 0.6931472, %v1213_v2 }
 0x12b   : > { %v590_v8 = vadd.f32 %v589_v6, %v582_v3 }
 0x12d   : > { %v2146_v11 = vmul.f32 %v1042_v57, %v590_v8 }
 0x17a   : > { %v594_v29 = vpop.permute.xlu1 %593 }
 0x17b   : > { %v595_v30 = vsel %vm592_vm0, %v594_v29, %v2072_v1 }
 0x17c   : > { %596 = vrot.lane.b32.xlu0 %v595_v30, %s1576_s1  ;;  %v766_v30 = vrot.slane %v765_v25, 1 }
 0x18a   : > { %v614_v31 = vpop.permute.xlu0 %613 }
 0x18b   : > { %v615_v32 = vsel %vm592_vm0, %v614_v31, %v611_v10 }
 0x18c   : > { %616 = vrot.lane.b32.xlu0 %v615_v32, %s1576_s1 }
 0x18e   : > { %v671_v33 = vpop.permute.xlu1 %670 }
 0x18f   : > { %v672_v34 = vsel %vm592_vm0, %v671_v33, %v2085_v19  ;;  %v767_v33 = vadd.f32 %v766_v30, %v765_v25 }
 0x190   : > { %673 = vrot.lane.b32.xlu1 %v672_v34, %s1576_s1 }
 0x191   : > { %768 = vst.msk [vmem:[%s2153_s30 + $0x1] sm:$0x1] %vm758_vm3, %v767_v33 }
 0x192   : > { %v714_v36 = vpop.permute.xlu1 %713 }
 0x193   : > { %v691_v35 = vpop.permute.xlu0 %690  ;;  %v715_v38 = vsel %vm592_vm0, %v714_v36, %v2092_v26 }
 0x194   : > { %v692_v37 = vsel %vm592_vm0, %v691_v35, %v688_v27 }
 0x195   : > { %693 = vrot.lane.b32.xlu1 %v692_v37, %s1576_s1 }
 0x197   : > { %v637_v39 = vpop.permute.xlu0 %636 }
 0x198   : > { %v638_v40 = vsel %vm592_vm0, %v637_v39, %v2098_v28 }
 0x199   : > { %639 = vrot.lane.b32.xlu0 %v638_v40, %s1576_s1  ;;  %716 = vrot.lane.b32.xlu1 %v715_v38, %s1576_s1  ;;  %v535_v38 = vlaneseq  ;;  %s1398_s1 = sshll.u32 %s1581_s3, 4  ;;  %s1399_s1 = int_to_ptr.vmem [resolvable:$false] %s1398_s1 }
 0x19a   : > { %s1400_s29 = scalar_lea.vmem %s1399_s1, 128  ;;  %p1401_p4 = scmp.lt.s32.totalorder %s2195_s5, %s1399_s1 }
 0x19b   : > { %v538_v40 = vand.u32 127, %v535_v38  ;;  %p1402_p2 = scmp.lt.s32.totalorder %s1400_s29, %s1394_s8 }
 0x19d   : > { %vm541_vm4 = vcmp.eq.s32.totalorder %v538_v40, 0  ;;  %vm542_vm5 = vcmp.eq.s32.totalorder %v538_v40, 15  ;;  %p1403_p0 = por %p1402_p2, %p1401_p4 }
 0x19f   : > { %p1404_p7 = pnand %p1403_p0, %p1397_p6 }
 0x1ee   : > { %v597_v41 = vpop.permute.xlu0 %596 }
 0x1ef   : > { %v598_v42 = vsel %vm592_vm0, %v597_v41, %v2072_v1 }
 0x1f0   : > { %600 = vrot.lane.b32.xlu0 %v598_v42, %s1577_s13 }
 0x1f4   : > { %604 = vrot.lane.b32.xlu0 %v598_v42, %s1578_s7 }
 0x1fe   : > { %v617_v43 = vpop.permute.xlu0 %616 }
 0x1ff   : > { %v618_v44 = vsel %vm592_vm0, %v617_v43, %v611_v10  ;;  %v779_v10 = vrot.slane %v778_v7, 4 }
 0x200   : > { %620 = vrot.lane.b32.xlu0 %v618_v44, %s1577_s13 }
 0x201   : > { %v780_v5 = vadd.f32 %v779_v10, %v778_v7 }
 0x202   : > { %v674_v48 = vpop.permute.xlu1 %673 }
 0x203   : > { %v675_v49 = vsel %vm592_vm0, %v674_v48, %v2085_v19  ;;  %v781_v18 = vrot.slane %v780_v5, 2 }
 0x204   : > { %677 = vrot.lane.b32.xlu0 %v675_v49, %s1577_s13 }
 0x205   : > { %v782_v29 = vadd.f32 %v781_v18, %v780_v5 }
 0x207   : > { %v694_v50 = vpop.permute.xlu1 %693  ;;  %v783_v32 = vrot.slane %v782_v29, 1 }
 0x208   : > { %681 = vrot.lane.b32.xlu0 %v675_v49, %s1578_s7  ;;  %v695_v62 = vsel %vm592_vm0, %v694_v50, %v688_v27  ;;  %v774_v27 = vadd.f32 %v773_v24, %v772_v21  ;;  %v536_v49 = vshrl.u32 %v535_v38, 7  ;;  %v665_v21 = vmul.f32 9.0, %v2072_v1 }
 0x209   : > { %v784_v35 = vadd.f32 %v783_v32, %v782_v29 }
 0x20a   : > { %v775_v31 = vrot.slane %v774_v27, 1  ;;  %v656_v54 = vsub.s32 7, %v536_v49  ;;  %vm539_vm6 = vcmp.eq.s32.totalorder %v536_v49, 0  ;;  %v662_v2 = vsub.s32 0, %v536_v49 }
 0x20b   : > { %v640_v51 = vpop.permute.xlu0 %639  ;;  %v717_v55 = vpop.permute.xlu1 %716  ;;  %785 = vst.msk [vmem:[%s2153_s30 + $0x3] sm:$0x1] %vm758_vm3, %v784_v35  ;;  %vm540_vm7 = vcmp.eq.s32.totalorder %v536_v49, 7 }
 0x20c   : > { %v641_v53 = vsel %vm592_vm0, %v640_v51, %v2098_v28  ;;  %v718_v58 = vsel %vm592_vm0, %v717_v55, %v2092_v26  ;;  %v776_v34 = vadd.f32 %v775_v31, %v774_v27 }
 0x20d   : > { %643 = vrot.lane.b32.xlu1 %v641_v53, %s1577_s13  ;;  %647 = vrot.lane.b32.xlu0 %v641_v53, %s1578_s7 }
 0x20e   : > { %777 = vst.msk [vmem:[%s2153_s30 + $0x2] sm:$0x1] %vm758_vm3, %v776_v34 }
 0x211   : > { %624 = vrot.lane.b32.xlu1 %v618_v44, %s1578_s7 }
 0x215   : > { %720 = vrot.lane.b32.xlu1 %v718_v58, %s1577_s13 }
 0x219   : > { %697 = vrot.lane.b32.xlu1 %v695_v62, %s1577_s13 }
 0x21d   : > { %701 = vrot.lane.b32.xlu1 %v695_v62, %s1578_s7 }
 0x221   : > { %724 = vrot.lane.b32.xlu1 %v718_v58, %s1578_s7 }
 0x262   : > { %v601_v36 = vpop.permute.xlu0 %600 }
 0x263   : > { %v603_v43 = vsel %vm541_vm4, 0.0, %v601_v36 }
 0x264   : > { %v608_v47 = vadd.f32 %v603_v43, %v2072_v1  ;;  %v742_v1 = vmul.f32 9.0, %v2085_v19 }
 0x266   : > { %v605_v37 = vpop.permute.xlu0 %604 }
 0x267   : > { %v607_v48 = vsel %vm542_vm5, 0.0, %v605_v37 }
 0x268   : > { %v609_v56 = vadd.f32 %v608_v47, %v607_v48 }
 0x26a   : > { %v653_v63 = vrot.slane %v609_v56, 7  ;;  %v659_v5 = vrot.slane %v609_v56, 1 }
 0x272   : > { %v621_v39 = vpop.permute.xlu0 %620 }
 0x273   : > { %v623_v42 = vsel %vm541_vm4, 0.0, %v621_v39  ;;  %v1580_v39 = vmov 6.1288595  }
 0x274   : > { %v629_v46 = vrot.slane %v623_v42, 1 }
 0x276   : > { %v678_v41 = vpop.permute.xlu0 %677  ;;  %v631_v53 = vadd.f32 %v629_v46, %v2077_v4 }
 0x277   : > { %v680_v0 = vsel %vm541_vm4, 0.0, %v678_v41 }
 0x278   : > { %v685_v8 = vadd.f32 %v680_v0, %v2085_v19 }
 0x27a   : > { %v682_v45 = vpop.permute.xlu0 %681 }
 0x27f   : > { %v644_v44 = vpop.permute.xlu1 %643  ;;  %v648_v57 = vpop.permute.xlu0 %647 }
 0x280   : > { %v646_v50 = vsel %vm541_vm4, 0.0, %v644_v44  ;;  %v650_v61 = vsel %vm542_vm5, 0.0, %v648_v57 }
 0x281   : > { %v651_v58 = vadd.f32 %v646_v50, %v2098_v28  ;;  %v684_v28 = vsel %vm542_vm5, 0.0, %v682_v45 }
 0x282   : > { %v686_v16 = vadd.f32 %v685_v8, %v684_v28 }
 0x283   : > { %v625_v51 = vpop.permute.xlu1 %624  ;;  %v652_v3 = vadd.f32 %v651_v58, %v650_v61 }
 0x284   : > { %v627_v52 = vsel %vm542_vm5, 0.0, %v625_v51  ;;  %v730_v30 = vrot.slane %v686_v16, 7  ;;  %v736_v33 = vrot.slane %v686_v16, 1 }
 0x285   : > { %v633_v55 = vrot.slane %v627_v52, 1  ;;  %v663_v10 = vrot.slane %v652_v3, %v662_v2 }
 0x287   : > { %v635_v59 = vadd.f32 %v633_v55, %v631_v53  ;;  %v721_v60 = vpop.permute.xlu1 %720  ;;  %v664_v20 = vsel %vm540_vm7, %v663_v10, %v659_v5 }
 0x288   : > { %v723_v14 = vsel %vm541_vm4, 0.0, %v721_v60 }
 0x289   : > { %v657_v62 = vrot.slane %v635_v59, %v656_v54  ;;  %v728_v24 = vadd.f32 %v723_v14, %v2092_v26 }
 0x28b   : > { %v698_v6 = vpop.permute.xlu1 %697  ;;  %v658_v4 = vsel %vm539_vm6, %v657_v62, %v653_v63 }
 0x28c   : > { %v700_v7 = vsel %vm541_vm4, 0.0, %v698_v6  ;;  %v666_v12 = vadd.f32 %v658_v4, %v609_v56 }
 0x28d   : > { %v706_v9 = vrot.slane %v700_v7, 1 }
 0x28e   : > { %v667_v22 = vadd.f32 %v666_v12, %v664_v20 }
 0x28f   : > { %v702_v13 = vpop.permute.xlu1 %701  ;;  %v708_v17 = vadd.f32 %v706_v9, %v2089_v23 }
 0x290   : > { %v704_v15 = vsel %vm542_vm5, 0.0, %v702_v13  ;;  %v668_v34 = vsub.f32 %v665_v21, %v667_v22 }
 0x291   : > { %v710_v18 = vrot.slane %v704_v15, 1 }
 0x292   : > { %vm669_vm8 = vcmp.ge.f32.partialorder %v668_v34, 0.1 }
 0x293   : > { %v712_v25 = vadd.f32 %v710_v18, %v708_v17  ;;  %v725_v27 = vpop.permute.xlu1 %724  ;;  %v747_v40 = vsel %vm669_vm8, -3.7721305, %v1580_v39 }
 0x294   : > { %v727_v29 = vsel %vm542_vm5, 0.0, %v725_v27 }
 0x295   : > { %v734_v31 = vrot.slane %v712_v25, %v656_v54  ;;  %v729_v32 = vadd.f32 %v728_v24, %v727_v29 }
 0x297   : > { %v735_v23 = vsel %vm539_vm6, %v734_v31, %v730_v30  ;;  %v740_v35 = vrot.slane %v729_v32, %v662_v2 }
 0x298   : > { %v743_v36 = vadd.f32 %v735_v23, %v686_v16 }
 0x299   : > { %v741_v37 = vsel %vm540_vm7, %v740_v35, %v736_v33 }
 0x29a   : > { %v744_v26 = vadd.f32 %v743_v36, %v741_v37 }
 0x29c   : > { %v745_v38 = vsub.f32 %v742_v1, %v744_v26 }
 0x29e   : > { %vm746_vm9 = vcmp.ge.f32.partialorder %v745_v38, 0.1 }
 0x29f   : > { %v748_v41 = vsel %vm746_vm9, %v747_v40, 0.0 }
 0x2a0   : > { %v749_v42 = vadd.f32 %v748_v41, %v2146_v11 }
 0x2a2   : > { %v751_v43 = vsel %vm750_vm2, %v749_v42, 0.0 }
 0x2a3   : > { %v752_v44 = vrot.slane %v751_v43, 4 }
 0x2a5   : > { %v753_v19 = vadd.f32 %v752_v44, %v751_v43 }
 0x2a7   : > { %v754_v45 = vrot.slane %v753_v19, 2 }
 0x2a9   : > { %v755_v46 = vadd.f32 %v754_v45, %v753_v19 }
 0x2ab   : > { %v756_v47 = vrot.slane %v755_v46, 1 }
 0x2ad   : > { %v757_v48 = vadd.f32 %v756_v47, %v755_v46 }
 0x2af   : > { %759 = vst.msk [vmem:[%s2153_s30] sm:$0x1] %vm758_vm3, %v757_v48 }
 0x2b0   : > { %1407 = shalt.err (!%p1404_p7)
}
 0x2b1   : > { %s1408_s27 = scalar_lea.hbm %s2193_s12, 64  ;;  %s1412_s7 = scalar_lea.hbm %s2371_s20, 256 }
 0x2b2   : > { %p1409_p8 = scmp.ne.s32.totalorder %s2193_s12, %s1408_s27  ;;  %p1413_p11 = scmp.lt.u32.totalorder %s2193_s12, %s2371_s20 }
 0x2b3   : > { %p1414_p1 = scmp.lt.u32.totalorder %s1412_s7, %s1408_s27  ;;  %p1416_p3 = scmp.lt.u32.totalorder %s1408_s27, %s2193_s12 }
 0x2b4   : > { %p1410_p9 = pnand %p1409_p8, %p2372_p12 }
 0x2b5   : > { %p1415_p10 = por %p1414_p1, %p1413_p11 }
 0x2b6   : > { %p1411_p5 = pneg %p1410_p9 }
 0x2b7   : > { %p1417_p13 = por %p1416_p3, %p1415_p10 }
 0x2b9   : > { %p1418_p6 = pnand %p1417_p13, %p1411_p5 }
 0x2bb   : > { %1421 = shalt.err (!%p1418_p6)
}
 0x2bc   : > { %1060 = dma.vmem_to_hbm [thread:$0]  (%p2372_p12), %s2195_s5, 64, %s2193_s12, %s787_s15  }
 0x2bd PF: > { %s2373_s17 = sld [smem:[#allocation22_spill]]  ;;  %s2374_s21 = sld [smem:[#allocation31_spill]] }
 0x2be   : > { %p1086_p4 = scmp.ge.s32.totalorder %s1568_s10, 2 }
 0x2c3   : > { %s814_s19 = sand.u32 1, %s2373_s17   ;;  %p2375_p2 = scmp.ne.s32.totalorder %s2374_s21, 0 }
 0x2c4   : > { %s815_s18 = scalar_lea.sflag [#allocation4], %s814_s19 }
 0x2c5   : > { %p1082_p0 = pnand %p1086_p4, %p2375_p2 }
 0x2c7   : > { %1503 = dma.done.wait (!%p1082_p0), %s815_s18, 64  }
 0x2c8   : > { %1505 = vsyncadd (!%p1082_p0), %s815_s18, 4294967232  ;;  %s31_s10 = sadd.s32 1, %s1568_s10   ;;  %s2377_s11 = sld [smem:[#allocation21_spill]] }
 0x2c9   : > { %p2226_p7 = scmp.ge.s32.totalorder %s31_s10, 6   ;;  %s2378_s5 = smov %s1834_s24 }
 0x2ca   : > { %s2379_s27 = sld [smem:[#allocation23_spill]]  ;;  %s2380_s12 = sld [smem:[#allocation24_spill]] }
 0x2cb   : > { %s2381_s29 = sld [smem:[#allocation33_spill]]  ;;  %s2382_s30 = sld [smem:[#allocation27_spill]] }
 0x2cc   : > { %s2383_s8 = sld [smem:[#allocation28_spill]]  ;;  %s2384_s15 = sld [smem:[#allocation32_spill]] }
 0x2cd   : > { %s2386_s21 = smov %s1520_s22  ;;  %s2387_s22 = smov %s1524_s23 }
 0x2ce   : > { %s2388_s23 = smov %s1953_s28  ;;  %s2389_s24 = smov %s2377_s11 }
 0x2cf   : > { %s2390_s25 = smov %s1536_s26  ;;  %s2391_s26 = smov %s2378_s5 }
 0x2d0   : > { %s2392_s28 = smov %s2380_s12  ;;  %s2393_s7 = smov %s1564_s9 }
 0x2d1   :  { %30 = sbr.rel (!%p2226_p7) target bundleno = 21 (0x15), region = 150 }
 0x2d2   : > { %s2394_s9 = smov %s2384_s15 }
 0x2d8   :  { %820 = vsyncpa [#allocation3], 1 }
 0x2d9   :  { %822 = vsyncpa [#allocation3 + $0x1], 1 }
 0x2da   :  { %823 = vsyncpa [#allocation6], 1 }
 0x2db   :  { %825 = vsyncpa [#allocation6 + $0x1], 1 }
 0x2dc   :  { %826 = vsyncpa [#allocation9], 1 }
 0x2dd   :  { %828 = vsyncpa [#allocation9 + $0x1], 1 }
 0x2de   :  { %829 = vsyncpa [#allocation12], 1 }
 0x2df   :  { %831 = vsyncpa [#allocation12 + $0x1], 1 }
 0x2e0   :  { %832 = vsyncpa [#allocation4], 1 }
 0x2e1   :  { %834 = vsyncpa [#allocation4 + $0x1], 1 }

</bundles_post_ra>
